<compile_context>
chip_gen: v7x
topology: tpu7x:2x2x1
jax: 0.10.0
libtpu: 0.0.40
codegen_flags: <defaults>
</compile_context>

<pallas_src>
import functools

import jax
import jax.numpy as jnp
from jax import lax
from jax.experimental import pallas as pl
from jax.experimental.pallas import tpu as pltpu


def bilstm_ner_kernel(
    emb_ref,      # (T*Bp, 2Ep)   bf16  [emb(t) | emb(T-1-t)] time-major slab
    wih_ref,      # (2Ep, 8H)     bf16  block-structured, gate-interleaved Wih
    b_ref,        # (1, 8H)       f32   gate-interleaved [bih+bhh] (both dirs)
    whh_ref,      # (2H, 8H)      bf16  block-diagonal, gate-interleaved Whh
    wfc_ref,      # (2H, TAGP)    bf16  fc weight [fwd rows ; bwd rows]
    bfc_ref,      # (1, TAGP)     f32   fc bias (padded)
    out_ref,      # (T*Bp, TAGP)  f32   logits (time-major, padded)
    xg_ref,       # scratch (T*Bp, 8H) f32  input projections (both dirs)
    hs_ref,       # scratch (T*Bp, 2H) bf16 hidden states [h_f | h_b]
    *, hidden, seq_len, batch,
):
    H, T, B = hidden, seq_len, batch
    H2 = 2 * H  # 128 lanes: one full vreg width per interleaved gate

    # Both directions' input projections in ONE lane-dense MXU matmul.
    # Row block s holds forward gates for time s and backward gates for time
    # T-1-s (the wrapper time-reversed the backward half of the input slab).
    xg_ref[...] = (
        jnp.dot(emb_ref[...], wih_ref[...], preferred_element_type=jnp.float32)
        + b_ref[...]
    )

    # Loop-carried interleaved states: h = [h_f | h_b], c = [c_f | c_b], f32.
    h = jnp.zeros((B, H2), jnp.float32)
    c = jnp.zeros((B, H2), jnp.float32)

    # Fully static unroll (T is small & fixed).  Both directions advance
    # together; one fused recurrent matmul per step (K = 2H = 128).
    for s in range(T):
        gates = xg_ref[s * B:(s + 1) * B, :] + jnp.dot(
            h.astype(jnp.bfloat16), whh_ref[...],
            preferred_element_type=jnp.float32)
        # Interleaved PyTorch gate order: [i_f|i_b][f_f|f_b][g_f|g_b][o_f|o_b].
        i = jax.nn.sigmoid(gates[:, 0 * H2:1 * H2])
        f = jax.nn.sigmoid(gates[:, 1 * H2:2 * H2])
        g = jnp.tanh(gates[:, 2 * H2:3 * H2])
        o = jax.nn.sigmoid(gates[:, 3 * H2:4 * H2])
        c = f * c + i * g
        h = o * jnp.tanh(c)

        # Store bf16 hidden states into their output time positions:
        # forward h belongs to time s, backward h to time T-1-s.
        h_bf = h.astype(jnp.bfloat16)
        hs_ref[s * B:(s + 1) * B, 0:H] = h_bf[:, 0:H]
        hs_ref[(T - 1 - s) * B:(T - s) * B, H:H2] = h_bf[:, H:H2]

    # Final FC: single K=128 matmul against the pre-concatenated fc weight.
    out_ref[...] = (
        jnp.dot(hs_ref[...], wfc_ref[...], preferred_element_type=jnp.float32)
        + bfc_ref[...]
    )


def _interleave_gates(wf, wb, H):
    """Interleave forward/backward gate blocks along the last axis.

    wf, wb: (..., 4H) in PyTorch gate order i,f,g,o.
    Returns (..., 8H) laid out as [i_f|i_b][f_f|f_b][g_f|g_b][o_f|o_b].
    """
    parts = []
    for g in range(4):
        parts.append(wf[..., g * H:(g + 1) * H])
        parts.append(wb[..., g * H:(g + 1) * H])
    return jnp.concatenate(parts, axis=-1)


def bilstm_ner_forward(emb, params, *, hidden, tagset):
    """emb: (B, T, E) float32 embedded tokens; params: dict of LSTM/FC params."""
    B, T, E = emb.shape
    H = hidden
    H2 = 2 * H
    B_pad = ((B + 7) // 8) * 8                 # sublane-align batch
    E_pad = ((E + 127) // 128) * 128           # lane-align embedding dim
    TAG_pad = ((tagset + 127) // 128) * 128    # lane-dense output store

    f32, bf16 = jnp.float32, jnp.bfloat16

    # Time-major padded input slab with the backward half time-reversed:
    # lanes 0:Ep hold emb(time s), lanes Ep:2Ep hold emb(time T-1-s).
    emb_tm = jnp.swapaxes(emb, 0, 1)                                   # (T, B, E)
    emb_tm = jnp.pad(emb_tm, ((0, 0), (0, B_pad - B), (0, E_pad - E)))  # (T, Bp, Ep)
    emb_cat = jnp.concatenate([emb_tm, emb_tm[::-1]], axis=-1)          # (T, Bp, 2Ep)
    emb_cat = emb_cat.reshape(T * B_pad, 2 * E_pad).astype(bf16)

    # Combined, gate-interleaved input-projection weight (2Ep, 8H):
    #   rows 0:Ep   -> forward Wih^T into forward gate lanes (zeros elsewhere)
    #   rows Ep:2Ep -> backward Wih^T into backward gate lanes.
    wihf_t = jnp.pad(params["wih_f"].T, ((0, E_pad - E), (0, 0)))   # (Ep, 4H)
    wihb_t = jnp.pad(params["wih_b"].T, ((0, E_pad - E), (0, 0)))   # (Ep, 4H)
    zeros_e = jnp.zeros_like(wihf_t)
    wih_all = jnp.concatenate(
        [_interleave_gates(wihf_t, zeros_e, H),
         _interleave_gates(zeros_e, wihb_t, H)], axis=0).astype(bf16)  # (2Ep, 8H)

    # Gate-interleaved combined bias.
    b_all = _interleave_gates(
        params["bih_f"] + params["bhh_f"],
        params["bih_b"] + params["bhh_b"], H)[None, :].astype(f32)      # (1, 8H)

    # Block-diagonal, gate-interleaved recurrent weight (2H, 8H).
    zeros_h = jnp.zeros((H, 4 * H), f32)
    whh_all = jnp.concatenate(
        [_interleave_gates(params["whh_f"].T, zeros_h, H),
         _interleave_gates(zeros_h, params["whh_b"].T, H)], axis=0).astype(bf16)

    # FC weight/bias: hs scratch layout is [h_f | h_b], same as torch concat.
    wfc_cat = jnp.pad(params["wfc"].T,
                      ((0, 0), (0, TAG_pad - tagset))).astype(bf16)     # (2H, TAGP)
    bfc = jnp.pad(params["bfc"], (0, TAG_pad - tagset))[None, :].astype(f32)

    vspec = pl.BlockSpec(memory_space=pltpu.MemorySpace.VMEM)
    kernel = functools.partial(bilstm_ner_kernel, hidden=H, seq_len=T, batch=B_pad)

    out2d = pl.pallas_call(
        kernel,
        out_shape=jax.ShapeDtypeStruct((T * B_pad, TAG_pad), f32),
        in_specs=[vspec] * 6,
        out_specs=vspec,
        scratch_shapes=[
            pltpu.VMEM((T * B_pad, 8 * H), f32),    # xg (both directions, interleaved)
            pltpu.VMEM((T * B_pad, H2), bf16),      # hs = [h_f | h_b]
        ],
    )(emb_cat, wih_all, b_all, whh_all, wfc_cat, bfc)

    out = out2d.reshape(T, B_pad, TAG_pad)[:, :B, :tagset]
    return jnp.swapaxes(out, 0, 1)   # (B, T, tagset)


# ------------------------- pure-JAX reference -------------------------------
def _lstm_dir_ref(xs, w_ih, w_hh, b_ih, b_hh, H):
    B = xs.shape[0]

    def step(carry, x_t):
        h, c = carry
        gates = x_t @ w_ih.T + b_ih + h @ w_hh.T + b_hh
        i = jax.nn.sigmoid(gates[:, 0:H])
        f = jax.nn.sigmoid(gates[:, H:2 * H])
        g = jnp.tanh(gates[:, 2 * H:3 * H])
        o = jax.nn.sigmoid(gates[:, 3 * H:4 * H])
        c = f * c + i * g
        h = o * jnp.tanh(c)
        return (h, c), h

    init = (jnp.zeros((B, H), jnp.float32), jnp.zeros((B, H), jnp.float32))
    _, hs = lax.scan(step, init, jnp.swapaxes(xs, 0, 1))
    return jnp.swapaxes(hs, 0, 1)  # (B, T, H)


def bilstm_ner_reference(emb, params, *, hidden, tagset):
    H = hidden
    h_f = _lstm_dir_ref(emb, params["wih_f"], params["whh_f"],
                        params["bih_f"], params["bhh_f"], H)
    h_b = _lstm_dir_ref(emb[:, ::-1, :], params["wih_b"], params["whh_b"],
                        params["bih_b"], params["bhh_b"], H)[:, ::-1, :]
    lstm_out = jnp.concatenate([h_f, h_b], axis=-1)
    return lstm_out @ params["wfc"].T + params["bfc"]


# ------------------------------ main ----------------------------------------
if __name__ == "__main__":
    # Small shapes consistent with the module: vocab=50, tagset=8, E=100,
    # hidden_dim=128 (=> 64 per LSTM direction), batch=2, seq=8.
    VOCAB, TAGSET, E, HIDDEN_DIM = 50, 8, 100, 128
    H = HIDDEN_DIM // 2
    B, T = 2, 8
    PAD_IDX = 1  # stands in for word2idx['PAD']

    key = jax.random.PRNGKey(0)
    ks = jax.random.split(key, 12)

    def uni(k, shape, bound):
        return jax.random.uniform(k, shape, jnp.float32, -bound, bound)

    emb_table = 0.1 * jax.random.normal(ks[0], (VOCAB, E), jnp.float32)
    emb_table = emb_table.at[PAD_IDX].set(0.0)  # padding_idx behavior

    kb = 1.0 / (H ** 0.5)
    params = {
        "wih_f": uni(ks[1], (4 * H, E), kb),
        "whh_f": uni(ks[2], (4 * H, H), kb),
        "bih_f": uni(ks[3], (4 * H,), kb),
        "bhh_f": uni(ks[4], (4 * H,), kb),
        "wih_b": uni(ks[5], (4 * H, E), kb),
        "whh_b": uni(ks[6], (4 * H, H), kb),
        "bih_b": uni(ks[7], (4 * H,), kb),
        "bhh_b": uni(ks[8], (4 * H,), kb),
        "wfc": uni(ks[9], (TAGSET, HIDDEN_DIM), 1.0 / (HIDDEN_DIM ** 0.5)),
        "bfc": uni(ks[10], (TAGSET,), 1.0 / (HIDDEN_DIM ** 0.5)),
    }

    # Token ids (a few PADs included), then the embedding gather (glue in JAX).
    # TODO(synk): the nn.Embedding gather (tiny table lookup) stays in JAX glue.
    x = jax.random.randint(ks[11], (B, T), 0, VOCAB, dtype=jnp.int32)
    x = x.at[:, -1].set(PAD_IDX)
    emb = jnp.take(emb_table, x, axis=0)  # (B, T, E)

    out = bilstm_ner_forward(emb, params, hidden=H, tagset=TAGSET)
    out = jax.block_until_ready(out)

    ref = bilstm_ner_reference(emb, params, hidden=H, tagset=TAGSET)
    assert out.shape == (B, T, TAGSET)
    assert jnp.allclose(out, ref, atol=1e-2, rtol=1e-2), "mismatch vs JAX reference"

    print("KERNEL_OK")
</pallas_src>

<mosaic_0001>
module attributes {stable_mosaic.version = 11 : i64} {
  func.func @bilstm_ner_kernel(%arg0: memref<64x256xbf16, #tpu.memory_space<vmem>>, %arg1: memref<256x512xbf16, #tpu.memory_space<vmem>>, %arg2: memref<1x512xf32, #tpu.memory_space<vmem>>, %arg3: memref<128x512xbf16, #tpu.memory_space<vmem>>, %arg4: memref<128x128xbf16, #tpu.memory_space<vmem>>, %arg5: memref<1x128xf32, #tpu.memory_space<vmem>>, %arg6: memref<64x128xf32, #tpu.memory_space<vmem>>, %arg7: memref<64x512xf32, #tpu.memory_space<vmem>>, %arg8: memref<64x128xbf16, #tpu.memory_space<vmem>>) attributes {dimension_semantics = [], scalar_prefetch = 0 : i64, scratch_operands = 2 : i64, tpu.core_type = #tpu.core_type<tc>} {
    %c0 = arith.constant 0 : index
    %c0_0 = arith.constant 0 : index
    %0 = vector.load %arg0[%c0, %c0_0] : memref<64x256xbf16, #tpu.memory_space<vmem>>, vector<64x256xbf16>
    %c0_1 = arith.constant 0 : index
    %c0_2 = arith.constant 0 : index
    %1 = vector.load %arg1[%c0_1, %c0_2] : memref<256x512xbf16, #tpu.memory_space<vmem>>, vector<256x512xbf16>
    %cst = arith.constant dense<0.000000e+00> : vector<64x512xf32>
    %2 = tpu.matmul %0, %1, %cst {dimension_numbers = #tpu.dot_dimension_numbers<[1], [0], [0], [1], [0, 0, 1, 1], [], []>} : vector<64x256xbf16>, vector<256x512xbf16>, vector<64x512xf32> -> vector<64x512xf32>
    %c0_3 = arith.constant 0 : index
    %c0_4 = arith.constant 0 : index
    %3 = vector.load %arg2[%c0_3, %c0_4] : memref<1x512xf32, #tpu.memory_space<vmem>>, vector<1x512xf32>
    %4 = vector.broadcast %3 : vector<1x512xf32> to vector<64x512xf32>
    %5 = arith.addf %2, %4 : vector<64x512xf32>
    %c0_5 = arith.constant 0 : index
    %c0_6 = arith.constant 0 : index
    %6 = vector.load %arg7[%c0_5, %c0_6] : memref<64x512xf32, #tpu.memory_space<vmem>>, vector<64x512xf32>
    tpu.vector_store %arg7[%c0_5, %c0_6], %5 {strides = array<i32>} : memref<64x512xf32, #tpu.memory_space<vmem>>, vector<64x512xf32>,
    %cst_7 = arith.constant 0.000000e+00 : f32
    %7 = vector.broadcast %cst_7 : f32 to vector<8x128xf32>
    %cst_8 = arith.constant 0.000000e+00 : f32
    %8 = vector.broadcast %cst_8 : f32 to vector<8x128xf32>
    %c0_9 = arith.constant 0 : index
    %c0_10 = arith.constant 0 : index
    %9 = vector.load %arg7[%c0_9, %c0_10] : memref<64x512xf32, #tpu.memory_space<vmem>>, vector<8x512xf32>
    %10 = arith.truncf %7 : vector<8x128xf32> to vector<8x128xbf16>
    %c0_11 = arith.constant 0 : index
    %c0_12 = arith.constant 0 : index
    %11 = vector.load %arg3[%c0_11, %c0_12] : memref<128x512xbf16, #tpu.memory_space<vmem>>, vector<128x512xbf16>
    %cst_13 = arith.constant dense<0.000000e+00> : vector<8x512xf32>
    %12 = tpu.matmul %10, %11, %cst_13 {dimension_numbers = #tpu.dot_dimension_numbers<[1], [0], [0], [1], [0, 0, 1, 1], [], []>} : vector<8x128xbf16>, vector<128x512xbf16>, vector<8x512xf32> -> vector<8x512xf32>
    %13 = arith.addf %9, %12 : vector<8x512xf32>
    %14 = vector.extract_strided_slice %13 {offsets = [0, 0], sizes = [8, 128], strides = [1, 1]} : vector<8x512xf32> to vector<8x128xf32>
    %15 = arith.negf %14 : vector<8x128xf32>
    %16 = math.exp %15 : vector<8x128xf32>
    %cst_14 = arith.constant 1.000000e+00 : f32
    %17 = vector.broadcast %cst_14 : f32 to vector<8x128xf32>
    %18 = arith.addf %17, %16 : vector<8x128xf32>
    %19 = arith.divf %17, %18 : vector<8x128xf32>
    %20 = vector.extract_strided_slice %13 {offsets = [0, 128], sizes = [8, 128], strides = [1, 1]} : vector<8x512xf32> to vector<8x128xf32>
    %21 = arith.negf %20 : vector<8x128xf32>
    %22 = math.exp %21 : vector<8x128xf32>
    %cst_15 = arith.constant 1.000000e+00 : f32
    %23 = vector.broadcast %cst_15 : f32 to vector<8x128xf32>
    %24 = arith.addf %23, %22 : vector<8x128xf32>
    %25 = arith.divf %23, %24 : vector<8x128xf32>
    %26 = vector.extract_strided_slice %13 {offsets = [0, 256], sizes = [8, 128], strides = [1, 1]} : vector<8x512xf32> to vector<8x128xf32>
    %27 = math.tanh %26 : vector<8x128xf32>
    %28 = vector.extract_strided_slice %13 {offsets = [0, 384], sizes = [8, 128], strides = [1, 1]} : vector<8x512xf32> to vector<8x128xf32>
    %29 = arith.negf %28 : vector<8x128xf32>
    %30 = math.exp %29 : vector<8x128xf32>
    %cst_16 = arith.constant 1.000000e+00 : f32
    %31 = vector.broadcast %cst_16 : f32 to vector<8x128xf32>
    %32 = arith.addf %31, %30 : vector<8x128xf32>
    %33 = arith.divf %31, %32 : vector<8x128xf32>
    %34 = arith.mulf %25, %8 : vector<8x128xf32>
    %35 = arith.mulf %19, %27 : vector<8x128xf32>
    %36 = arith.addf %34, %35 : vector<8x128xf32>
    %37 = math.tanh %36 : vector<8x128xf32>
    %38 = arith.mulf %33, %37 : vector<8x128xf32>
    %39 = arith.truncf %38 : vector<8x128xf32> to vector<8x128xbf16>
    %40 = vector.extract_strided_slice %39 {offsets = [0, 0], sizes = [8, 64], strides = [1, 1]} : vector<8x128xbf16> to vector<8x64xbf16>
    %c0_17 = arith.constant 0 : index
    %c0_18 = arith.constant 0 : index
    %41 = vector.load %arg8[%c0_17, %c0_18] : memref<64x128xbf16, #tpu.memory_space<vmem>>, vector<8x64xbf16>
    tpu.vector_store %arg8[%c0_17, %c0_18], %40 {strides = array<i32>} : memref<64x128xbf16, #tpu.memory_space<vmem>>, vector<8x64xbf16>,
    %42 = vector.extract_strided_slice %39 {offsets = [0, 64], sizes = [8, 64], strides = [1, 1]} : vector<8x128xbf16> to vector<8x64xbf16>
    %c56 = arith.constant 56 : index
    %c64 = arith.constant 64 : index
    %43 = vector.load %arg8[%c56, %c64] : memref<64x128xbf16, #tpu.memory_space<vmem>>, vector<8x64xbf16>
    tpu.vector_store %arg8[%c56, %c64], %42 {strides = array<i32>} : memref<64x128xbf16, #tpu.memory_space<vmem>>, vector<8x64xbf16>,
    %c8 = arith.constant 8 : index
    %c0_19 = arith.constant 0 : index
    %44 = vector.load %arg7[%c8, %c0_19] : memref<64x512xf32, #tpu.memory_space<vmem>>, vector<8x512xf32>
    %45 = arith.truncf %38 : vector<8x128xf32> to vector<8x128xbf16>
    %c0_20 = arith.constant 0 : index
    %c0_21 = arith.constant 0 : index
    %46 = vector.load %arg3[%c0_20, %c0_21] : memref<128x512xbf16, #tpu.memory_space<vmem>>, vector<128x512xbf16>
    %cst_22 = arith.constant dense<0.000000e+00> : vector<8x512xf32>
    %47 = tpu.matmul %45, %46, %cst_22 {dimension_numbers = #tpu.dot_dimension_numbers<[1], [0], [0], [1], [0, 0, 1, 1], [], []>} : vector<8x128xbf16>, vector<128x512xbf16>, vector<8x512xf32> -> vector<8x512xf32>
    %48 = arith.addf %44, %47 : vector<8x512xf32>
    %49 = vector.extract_strided_slice %48 {offsets = [0, 0], sizes = [8, 128], strides = [1, 1]} : vector<8x512xf32> to vector<8x128xf32>
    %50 = arith.negf %49 : vector<8x128xf32>
    %51 = math.exp %50 : vector<8x128xf32>
    %cst_23 = arith.constant 1.000000e+00 : f32
    %52 = vector.broadcast %cst_23 : f32 to vector<8x128xf32>
    %53 = arith.addf %52, %51 : vector<8x128xf32>
    %54 = arith.divf %52, %53 : vector<8x128xf32>
    %55 = vector.extract_strided_slice %48 {offsets = [0, 128], sizes = [8, 128], strides = [1, 1]} : vector<8x512xf32> to vector<8x128xf32>
    %56 = arith.negf %55 : vector<8x128xf32>
    %57 = math.exp %56 : vector<8x128xf32>
    %cst_24 = arith.constant 1.000000e+00 : f32
    %58 = vector.broadcast %cst_24 : f32 to vector<8x128xf32>
    %59 = arith.addf %58, %57 : vector<8x128xf32>
    %60 = arith.divf %58, %59 : vector<8x128xf32>
    %61 = vector.extract_strided_slice %48 {offsets = [0, 256], sizes = [8, 128], strides = [1, 1]} : vector<8x512xf32> to vector<8x128xf32>
    %62 = math.tanh %61 : vector<8x128xf32>
    %63 = vector.extract_strided_slice %48 {offsets = [0, 384], sizes = [8, 128], strides = [1, 1]} : vector<8x512xf32> to vector<8x128xf32>
    %64 = arith.negf %63 : vector<8x128xf32>
    %65 = math.exp %64 : vector<8x128xf32>
    %cst_25 = arith.constant 1.000000e+00 : f32
    %66 = vector.broadcast %cst_25 : f32 to vector<8x128xf32>
    %67 = arith.addf %66, %65 : vector<8x128xf32>
    %68 = arith.divf %66, %67 : vector<8x128xf32>
    %69 = arith.mulf %60, %36 : vector<8x128xf32>
    %70 = arith.mulf %54, %62 : vector<8x128xf32>
    %71 = arith.addf %69, %70 : vector<8x128xf32>
    %72 = math.tanh %71 : vector<8x128xf32>
    %73 = arith.mulf %68, %72 : vector<8x128xf32>
    %74 = arith.truncf %73 : vector<8x128xf32> to vector<8x128xbf16>
    %75 = vector.extract_strided_slice %74 {offsets = [0, 0], sizes = [8, 64], strides = [1, 1]} : vector<8x128xbf16> to vector<8x64xbf16>
    %c8_26 = arith.constant 8 : index
    %c0_27 = arith.constant 0 : index
    %76 = vector.load %arg8[%c8_26, %c0_27] : memref<64x128xbf16, #tpu.memory_space<vmem>>, vector<8x64xbf16>
    tpu.vector_store %arg8[%c8_26, %c0_27], %75 {strides = array<i32>} : memref<64x128xbf16, #tpu.memory_space<vmem>>, vector<8x64xbf16>,
    %77 = vector.extract_strided_slice %74 {offsets = [0, 64], sizes = [8, 64], strides = [1, 1]} : vector<8x128xbf16> to vector<8x64xbf16>
    %c48 = arith.constant 48 : index
    %c64_28 = arith.constant 64 : index
    %78 = vector.load %arg8[%c48, %c64_28] : memref<64x128xbf16, #tpu.memory_space<vmem>>, vector<8x64xbf16>
    tpu.vector_store %arg8[%c48, %c64_28], %77 {strides = array<i32>} : memref<64x128xbf16, #tpu.memory_space<vmem>>, vector<8x64xbf16>,
    %c16 = arith.constant 16 : index
    %c0_29 = arith.constant 0 : index
    %79 = vector.load %arg7[%c16, %c0_29] : memref<64x512xf32, #tpu.memory_space<vmem>>, vector<8x512xf32>
    %80 = arith.truncf %73 : vector<8x128xf32> to vector<8x128xbf16>
    %c0_30 = arith.constant 0 : index
    %c0_31 = arith.constant 0 : index
    %81 = vector.load %arg3[%c0_30, %c0_31] : memref<128x512xbf16, #tpu.memory_space<vmem>>, vector<128x512xbf16>
    %cst_32 = arith.constant dense<0.000000e+00> : vector<8x512xf32>
    %82 = tpu.matmul %80, %81, %cst_32 {dimension_numbers = #tpu.dot_dimension_numbers<[1], [0], [0], [1], [0, 0, 1, 1], [], []>} : vector<8x128xbf16>, vector<128x512xbf16>, vector<8x512xf32> -> vector<8x512xf32>
    %83 = arith.addf %79, %82 : vector<8x512xf32>
    %84 = vector.extract_strided_slice %83 {offsets = [0, 0], sizes = [8, 128], strides = [1, 1]} : vector<8x512xf32> to vector<8x128xf32>
    %85 = arith.negf %84 : vector<8x128xf32>
    %86 = math.exp %85 : vector<8x128xf32>
    %cst_33 = arith.constant 1.000000e+00 : f32
    %87 = vector.broadcast %cst_33 : f32 to vector<8x128xf32>
    %88 = arith.addf %87, %86 : vector<8x128xf32>
    %89 = arith.divf %87, %88 : vector<8x128xf32>
    %90 = vector.extract_strided_slice %83 {offsets = [0, 128], sizes = [8, 128], strides = [1, 1]} : vector<8x512xf32> to vector<8x128xf32>
    %91 = arith.negf %90 : vector<8x128xf32>
    %92 = math.exp %91 : vector<8x128xf32>
    %cst_34 = arith.constant 1.000000e+00 : f32
    %93 = vector.broadcast %cst_34 : f32 to vector<8x128xf32>
    %94 = arith.addf %93, %92 : vector<8x128xf32>
    %95 = arith.divf %93, %94 : vector<8x128xf32>
    %96 = vector.extract_strided_slice %83 {offsets = [0, 256], sizes = [8, 128], strides = [1, 1]} : vector<8x512xf32> to vector<8x128xf32>
    %97 = math.tanh %96 : vector<8x128xf32>
    %98 = vector.extract_strided_slice %83 {offsets = [0, 384], sizes = [8, 128], strides = [1, 1]} : vector<8x512xf32> to vector<8x128xf32>
    %99 = arith.negf %98 : vector<8x128xf32>
    %100 = math.exp %99 : vector<8x128xf32>
    %cst_35 = arith.constant 1.000000e+00 : f32
    %101 = vector.broadcast %cst_35 : f32 to vector<8x128xf32>
    %102 = arith.addf %101, %100 : vector<8x128xf32>
    %103 = arith.divf %101, %102 : vector<8x128xf32>
    %104 = arith.mulf %95, %71 : vector<8x128xf32>
    %105 = arith.mulf %89, %97 : vector<8x128xf32>
    %106 = arith.addf %104, %105 : vector<8x128xf32>
    %107 = math.tanh %106 : vector<8x128xf32>
    %108 = arith.mulf %103, %107 : vector<8x128xf32>
    %109 = arith.truncf %108 : vector<8x128xf32> to vector<8x128xbf16>
    %110 = vector.extract_strided_slice %109 {offsets = [0, 0], sizes = [8, 64], strides = [1, 1]} : vector<8x128xbf16> to vector<8x64xbf16>
    %c16_36 = arith.constant 16 : index
    %c0_37 = arith.constant 0 : index
    %111 = vector.load %arg8[%c16_36, %c0_37] : memref<64x128xbf16, #tpu.memory_space<vmem>>, vector<8x64xbf16>
    tpu.vector_store %arg8[%c16_36, %c0_37], %110 {strides = array<i32>} : memref<64x128xbf16, #tpu.memory_space<vmem>>, vector<8x64xbf16>,
    %112 = vector.extract_strided_slice %109 {offsets = [0, 64], sizes = [8, 64], strides = [1, 1]} : vector<8x128xbf16> to vector<8x64xbf16>
    %c40 = arith.constant 40 : index
    %c64_38 = arith.constant 64 : index
    %113 = vector.load %arg8[%c40, %c64_38] : memref<64x128xbf16, #tpu.memory_space<vmem>>, vector<8x64xbf16>
    tpu.vector_store %arg8[%c40, %c64_38], %112 {strides = array<i32>} : memref<64x128xbf16, #tpu.memory_space<vmem>>, vector<8x64xbf16>,
    %c24 = arith.constant 24 : index
    %c0_39 = arith.constant 0 : index
    %114 = vector.load %arg7[%c24, %c0_39] : memref<64x512xf32, #tpu.memory_space<vmem>>, vector<8x512xf32>
    %115 = arith.truncf %108 : vector<8x128xf32> to vector<8x128xbf16>
    %c0_40 = arith.constant 0 : index
    %c0_41 = arith.constant 0 : index
    %116 = vector.load %arg3[%c0_40, %c0_41] : memref<128x512xbf16, #tpu.memory_space<vmem>>, vector<128x512xbf16>
    %cst_42 = arith.constant dense<0.000000e+00> : vector<8x512xf32>
    %117 = tpu.matmul %115, %116, %cst_42 {dimension_numbers = #tpu.dot_dimension_numbers<[1], [0], [0], [1], [0, 0, 1, 1], [], []>} : vector<8x128xbf16>, vector<128x512xbf16>, vector<8x512xf32> -> vector<8x512xf32>
    %118 = arith.addf %114, %117 : vector<8x512xf32>
    %119 = vector.extract_strided_slice %118 {offsets = [0, 0], sizes = [8, 128], strides = [1, 1]} : vector<8x512xf32> to vector<8x128xf32>
    %120 = arith.negf %119 : vector<8x128xf32>
    %121 = math.exp %120 : vector<8x128xf32>
    %cst_43 = arith.constant 1.000000e+00 : f32
    %122 = vector.broadcast %cst_43 : f32 to vector<8x128xf32>
    %123 = arith.addf %122, %121 : vector<8x128xf32>
    %124 = arith.divf %122, %123 : vector<8x128xf32>
    %125 = vector.extract_strided_slice %118 {offsets = [0, 128], sizes = [8, 128], strides = [1, 1]} : vector<8x512xf32> to vector<8x128xf32>
    %126 = arith.negf %125 : vector<8x128xf32>
    %127 = math.exp %126 : vector<8x128xf32>
    %cst_44 = arith.constant 1.000000e+00 : f32
    %128 = vector.broadcast %cst_44 : f32 to vector<8x128xf32>
    %129 = arith.addf %128, %127 : vector<8x128xf32>
    %130 = arith.divf %128, %129 : vector<8x128xf32>
    %131 = vector.extract_strided_slice %118 {offsets = [0, 256], sizes = [8, 128], strides = [1, 1]} : vector<8x512xf32> to vector<8x128xf32>
    %132 = math.tanh %131 : vector<8x128xf32>
    %133 = vector.extract_strided_slice %118 {offsets = [0, 384], sizes = [8, 128], strides = [1, 1]} : vector<8x512xf32> to vector<8x128xf32>
    %134 = arith.negf %133 : vector<8x128xf32>
    %135 = math.exp %134 : vector<8x128xf32>
    %cst_45 = arith.constant 1.000000e+00 : f32
    %136 = vector.broadcast %cst_45 : f32 to vector<8x128xf32>
    %137 = arith.addf %136, %135 : vector<8x128xf32>
    %138 = arith.divf %136, %137 : vector<8x128xf32>
    %139 = arith.mulf %130, %106 : vector<8x128xf32>
    %140 = arith.mulf %124, %132 : vector<8x128xf32>
    %141 = arith.addf %139, %140 : vector<8x128xf32>
    %142 = math.tanh %141 : vector<8x128xf32>
    %143 = arith.mulf %138, %142 : vector<8x128xf32>
    %144 = arith.truncf %143 : vector<8x128xf32> to vector<8x128xbf16>
    %145 = vector.extract_strided_slice %144 {offsets = [0, 0], sizes = [8, 64], strides = [1, 1]} : vector<8x128xbf16> to vector<8x64xbf16>
    %c24_46 = arith.constant 24 : index
    %c0_47 = arith.constant 0 : index
    %146 = vector.load %arg8[%c24_46, %c0_47] : memref<64x128xbf16, #tpu.memory_space<vmem>>, vector<8x64xbf16>
    tpu.vector_store %arg8[%c24_46, %c0_47], %145 {strides = array<i32>} : memref<64x128xbf16, #tpu.memory_space<vmem>>, vector<8x64xbf16>,
    %147 = vector.extract_strided_slice %144 {offsets = [0, 64], sizes = [8, 64], strides = [1, 1]} : vector<8x128xbf16> to vector<8x64xbf16>
    %c32 = arith.constant 32 : index
    %c64_48 = arith.constant 64 : index
    %148 = vector.load %arg8[%c32, %c64_48] : memref<64x128xbf16, #tpu.memory_space<vmem>>, vector<8x64xbf16>
    tpu.vector_store %arg8[%c32, %c64_48], %147 {strides = array<i32>} : memref<64x128xbf16, #tpu.memory_space<vmem>>, vector<8x64xbf16>,
    %c32_49 = arith.constant 32 : index
    %c0_50 = arith.constant 0 : index
    %149 = vector.load %arg7[%c32_49, %c0_50] : memref<64x512xf32, #tpu.memory_space<vmem>>, vector<8x512xf32>
    %150 = arith.truncf %143 : vector<8x128xf32> to vector<8x128xbf16>
    %c0_51 = arith.constant 0 : index
    %c0_52 = arith.constant 0 : index
    %151 = vector.load %arg3[%c0_51, %c0_52] : memref<128x512xbf16, #tpu.memory_space<vmem>>, vector<128x512xbf16>
    %cst_53 = arith.constant dense<0.000000e+00> : vector<8x512xf32>
    %152 = tpu.matmul %150, %151, %cst_53 {dimension_numbers = #tpu.dot_dimension_numbers<[1], [0], [0], [1], [0, 0, 1, 1], [], []>} : vector<8x128xbf16>, vector<128x512xbf16>, vector<8x512xf32> -> vector<8x512xf32>
    %153 = arith.addf %149, %152 : vector<8x512xf32>
    %154 = vector.extract_strided_slice %153 {offsets = [0, 0], sizes = [8, 128], strides = [1, 1]} : vector<8x512xf32> to vector<8x128xf32>
    %155 = arith.negf %154 : vector<8x128xf32>
    %156 = math.exp %155 : vector<8x128xf32>
    %cst_54 = arith.constant 1.000000e+00 : f32
    %157 = vector.broadcast %cst_54 : f32 to vector<8x128xf32>
    %158 = arith.addf %157, %156 : vector<8x128xf32>
    %159 = arith.divf %157, %158 : vector<8x128xf32>
    %160 = vector.extract_strided_slice %153 {offsets = [0, 128], sizes = [8, 128], strides = [1, 1]} : vector<8x512xf32> to vector<8x128xf32>
    %161 = arith.negf %160 : vector<8x128xf32>
    %162 = math.exp %161 : vector<8x128xf32>
    %cst_55 = arith.constant 1.000000e+00 : f32
    %163 = vector.broadcast %cst_55 : f32 to vector<8x128xf32>
    %164 = arith.addf %163, %162 : vector<8x128xf32>
    %165 = arith.divf %163, %164 : vector<8x128xf32>
    %166 = vector.extract_strided_slice %153 {offsets = [0, 256], sizes = [8, 128], strides = [1, 1]} : vector<8x512xf32> to vector<8x128xf32>
    %167 = math.tanh %166 : vector<8x128xf32>
    %168 = vector.extract_strided_slice %153 {offsets = [0, 384], sizes = [8, 128], strides = [1, 1]} : vector<8x512xf32> to vector<8x128xf32>
    %169 = arith.negf %168 : vector<8x128xf32>
    %170 = math.exp %169 : vector<8x128xf32>
    %cst_56 = arith.constant 1.000000e+00 : f32
    %171 = vector.broadcast %cst_56 : f32 to vector<8x128xf32>
    %172 = arith.addf %171, %170 : vector<8x128xf32>
    %173 = arith.divf %171, %172 : vector<8x128xf32>
    %174 = arith.mulf %165, %141 : vector<8x128xf32>
    %175 = arith.mulf %159, %167 : vector<8x128xf32>
    %176 = arith.addf %174, %175 : vector<8x128xf32>
    %177 = math.tanh %176 : vector<8x128xf32>
    %178 = arith.mulf %173, %177 : vector<8x128xf32>
    %179 = arith.truncf %178 : vector<8x128xf32> to vector<8x128xbf16>
    %180 = vector.extract_strided_slice %179 {offsets = [0, 0], sizes = [8, 64], strides = [1, 1]} : vector<8x128xbf16> to vector<8x64xbf16>
    %c32_57 = arith.constant 32 : index
    %c0_58 = arith.constant 0 : index
    %181 = vector.load %arg8[%c32_57, %c0_58] : memref<64x128xbf16, #tpu.memory_space<vmem>>, vector<8x64xbf16>
    tpu.vector_store %arg8[%c32_57, %c0_58], %180 {strides = array<i32>} : memref<64x128xbf16, #tpu.memory_space<vmem>>, vector<8x64xbf16>,
    %182 = vector.extract_strided_slice %179 {offsets = [0, 64], sizes = [8, 64], strides = [1, 1]} : vector<8x128xbf16> to vector<8x64xbf16>
    %c24_59 = arith.constant 24 : index
    %c64_60 = arith.constant 64 : index
    %183 = vector.load %arg8[%c24_59, %c64_60] : memref<64x128xbf16, #tpu.memory_space<vmem>>, vector<8x64xbf16>
    tpu.vector_store %arg8[%c24_59, %c64_60], %182 {strides = array<i32>} : memref<64x128xbf16, #tpu.memory_space<vmem>>, vector<8x64xbf16>,
    %c40_61 = arith.constant 40 : index
    %c0_62 = arith.constant 0 : index
    %184 = vector.load %arg7[%c40_61, %c0_62] : memref<64x512xf32, #tpu.memory_space<vmem>>, vector<8x512xf32>
    %185 = arith.truncf %178 : vector<8x128xf32> to vector<8x128xbf16>
    %c0_63 = arith.constant 0 : index
    %c0_64 = arith.constant 0 : index
    %186 = vector.load %arg3[%c0_63, %c0_64] : memref<128x512xbf16, #tpu.memory_space<vmem>>, vector<128x512xbf16>
    %cst_65 = arith.constant dense<0.000000e+00> : vector<8x512xf32>
    %187 = tpu.matmul %185, %186, %cst_65 {dimension_numbers = #tpu.dot_dimension_numbers<[1], [0], [0], [1], [0, 0, 1, 1], [], []>} : vector<8x128xbf16>, vector<128x512xbf16>, vector<8x512xf32> -> vector<8x512xf32>
    %188 = arith.addf %184, %187 : vector<8x512xf32>
    %189 = vector.extract_strided_slice %188 {offsets = [0, 0], sizes = [8, 128], strides = [1, 1]} : vector<8x512xf32> to vector<8x128xf32>
    %190 = arith.negf %189 : vector<8x128xf32>
    %191 = math.exp %190 : vector<8x128xf32>
    %cst_66 = arith.constant 1.000000e+00 : f32
    %192 = vector.broadcast %cst_66 : f32 to vector<8x128xf32>
    %193 = arith.addf %192, %191 : vector<8x128xf32>
    %194 = arith.divf %192, %193 : vector<8x128xf32>
    %195 = vector.extract_strided_slice %188 {offsets = [0, 128], sizes = [8, 128], strides = [1, 1]} : vector<8x512xf32> to vector<8x128xf32>
    %196 = arith.negf %195 : vector<8x128xf32>
    %197 = math.exp %196 : vector<8x128xf32>
    %cst_67 = arith.constant 1.000000e+00 : f32
    %198 = vector.broadcast %cst_67 : f32 to vector<8x128xf32>
    %199 = arith.addf %198, %197 : vector<8x128xf32>
    %200 = arith.divf %198, %199 : vector<8x128xf32>
    %201 = vector.extract_strided_slice %188 {offsets = [0, 256], sizes = [8, 128], strides = [1, 1]} : vector<8x512xf32> to vector<8x128xf32>
    %202 = math.tanh %201 : vector<8x128xf32>
    %203 = vector.extract_strided_slice %188 {offsets = [0, 384], sizes = [8, 128], strides = [1, 1]} : vector<8x512xf32> to vector<8x128xf32>
    %204 = arith.negf %203 : vector<8x128xf32>
    %205 = math.exp %204 : vector<8x128xf32>
    %cst_68 = arith.constant 1.000000e+00 : f32
    %206 = vector.broadcast %cst_68 : f32 to vector<8x128xf32>
    %207 = arith.addf %206, %205 : vector<8x128xf32>
    %208 = arith.divf %206, %207 : vector<8x128xf32>
    %209 = arith.mulf %200, %176 : vector<8x128xf32>
    %210 = arith.mulf %194, %202 : vector<8x128xf32>
    %211 = arith.addf %209, %210 : vector<8x128xf32>
    %212 = math.tanh %211 : vector<8x128xf32>
    %213 = arith.mulf %208, %212 : vector<8x128xf32>
    %214 = arith.truncf %213 : vector<8x128xf32> to vector<8x128xbf16>
    %215 = vector.extract_strided_slice %214 {offsets = [0, 0], sizes = [8, 64], strides = [1, 1]} : vector<8x128xbf16> to vector<8x64xbf16>
    %c40_69 = arith.constant 40 : index
    %c0_70 = arith.constant 0 : index
    %216 = vector.load %arg8[%c40_69, %c0_70] : memref<64x128xbf16, #tpu.memory_space<vmem>>, vector<8x64xbf16>
    tpu.vector_store %arg8[%c40_69, %c0_70], %215 {strides = array<i32>} : memref<64x128xbf16, #tpu.memory_space<vmem>>, vector<8x64xbf16>,
    %217 = vector.extract_strided_slice %214 {offsets = [0, 64], sizes = [8, 64], strides = [1, 1]} : vector<8x128xbf16> to vector<8x64xbf16>
    %c16_71 = arith.constant 16 : index
    %c64_72 = arith.constant 64 : index
    %218 = vector.load %arg8[%c16_71, %c64_72] : memref<64x128xbf16, #tpu.memory_space<vmem>>, vector<8x64xbf16>
    tpu.vector_store %arg8[%c16_71, %c64_72], %217 {strides = array<i32>} : memref<64x128xbf16, #tpu.memory_space<vmem>>, vector<8x64xbf16>,
    %c48_73 = arith.constant 48 : index
    %c0_74 = arith.constant 0 : index
    %219 = vector.load %arg7[%c48_73, %c0_74] : memref<64x512xf32, #tpu.memory_space<vmem>>, vector<8x512xf32>
    %220 = arith.truncf %213 : vector<8x128xf32> to vector<8x128xbf16>
    %c0_75 = arith.constant 0 : index
    %c0_76 = arith.constant 0 : index
    %221 = vector.load %arg3[%c0_75, %c0_76] : memref<128x512xbf16, #tpu.memory_space<vmem>>, vector<128x512xbf16>
    %cst_77 = arith.constant dense<0.000000e+00> : vector<8x512xf32>
    %222 = tpu.matmul %220, %221, %cst_77 {dimension_numbers = #tpu.dot_dimension_numbers<[1], [0], [0], [1], [0, 0, 1, 1], [], []>} : vector<8x128xbf16>, vector<128x512xbf16>, vector<8x512xf32> -> vector<8x512xf32>
    %223 = arith.addf %219, %222 : vector<8x512xf32>
    %224 = vector.extract_strided_slice %223 {offsets = [0, 0], sizes = [8, 128], strides = [1, 1]} : vector<8x512xf32> to vector<8x128xf32>
    %225 = arith.negf %224 : vector<8x128xf32>
    %226 = math.exp %225 : vector<8x128xf32>
    %cst_78 = arith.constant 1.000000e+00 : f32
    %227 = vector.broadcast %cst_78 : f32 to vector<8x128xf32>
    %228 = arith.addf %227, %226 : vector<8x128xf32>
    %229 = arith.divf %227, %228 : vector<8x128xf32>
    %230 = vector.extract_strided_slice %223 {offsets = [0, 128], sizes = [8, 128], strides = [1, 1]} : vector<8x512xf32> to vector<8x128xf32>
    %231 = arith.negf %230 : vector<8x128xf32>
    %232 = math.exp %231 : vector<8x128xf32>
    %cst_79 = arith.constant 1.000000e+00 : f32
    %233 = vector.broadcast %cst_79 : f32 to vector<8x128xf32>
    %234 = arith.addf %233, %232 : vector<8x128xf32>
    %235 = arith.divf %233, %234 : vector<8x128xf32>
    %236 = vector.extract_strided_slice %223 {offsets = [0, 256], sizes = [8, 128], strides = [1, 1]} : vector<8x512xf32> to vector<8x128xf32>
    %237 = math.tanh %236 : vector<8x128xf32>
    %238 = vector.extract_strided_slice %223 {offsets = [0, 384], sizes = [8, 128], strides = [1, 1]} : vector<8x512xf32> to vector<8x128xf32>
    %239 = arith.negf %238 : vector<8x128xf32>
    %240 = math.exp %239 : vector<8x128xf32>
    %cst_80 = arith.constant 1.000000e+00 : f32
    %241 = vector.broadcast %cst_80 : f32 to vector<8x128xf32>
    %242 = arith.addf %241, %240 : vector<8x128xf32>
    %243 = arith.divf %241, %242 : vector<8x128xf32>
    %244 = arith.mulf %235, %211 : vector<8x128xf32>
    %245 = arith.mulf %229, %237 : vector<8x128xf32>
    %246 = arith.addf %244, %245 : vector<8x128xf32>
    %247 = math.tanh %246 : vector<8x128xf32>
    %248 = arith.mulf %243, %247 : vector<8x128xf32>
    %249 = arith.truncf %248 : vector<8x128xf32> to vector<8x128xbf16>
    %250 = vector.extract_strided_slice %249 {offsets = [0, 0], sizes = [8, 64], strides = [1, 1]} : vector<8x128xbf16> to vector<8x64xbf16>
    %c48_81 = arith.constant 48 : index
    %c0_82 = arith.constant 0 : index
    %251 = vector.load %arg8[%c48_81, %c0_82] : memref<64x128xbf16, #tpu.memory_space<vmem>>, vector<8x64xbf16>
    tpu.vector_store %arg8[%c48_81, %c0_82], %250 {strides = array<i32>} : memref<64x128xbf16, #tpu.memory_space<vmem>>, vector<8x64xbf16>,
    %252 = vector.extract_strided_slice %249 {offsets = [0, 64], sizes = [8, 64], strides = [1, 1]} : vector<8x128xbf16> to vector<8x64xbf16>
    %c8_83 = arith.constant 8 : index
    %c64_84 = arith.constant 64 : index
    %253 = vector.load %arg8[%c8_83, %c64_84] : memref<64x128xbf16, #tpu.memory_space<vmem>>, vector<8x64xbf16>
    tpu.vector_store %arg8[%c8_83, %c64_84], %252 {strides = array<i32>} : memref<64x128xbf16, #tpu.memory_space<vmem>>, vector<8x64xbf16>,
    %c56_85 = arith.constant 56 : index
    %c0_86 = arith.constant 0 : index
    %254 = vector.load %arg7[%c56_85, %c0_86] : memref<64x512xf32, #tpu.memory_space<vmem>>, vector<8x512xf32>
    %255 = arith.truncf %248 : vector<8x128xf32> to vector<8x128xbf16>
    %c0_87 = arith.constant 0 : index
    %c0_88 = arith.constant 0 : index
    %256 = vector.load %arg3[%c0_87, %c0_88] : memref<128x512xbf16, #tpu.memory_space<vmem>>, vector<128x512xbf16>
    %cst_89 = arith.constant dense<0.000000e+00> : vector<8x512xf32>
    %257 = tpu.matmul %255, %256, %cst_89 {dimension_numbers = #tpu.dot_dimension_numbers<[1], [0], [0], [1], [0, 0, 1, 1], [], []>} : vector<8x128xbf16>, vector<128x512xbf16>, vector<8x512xf32> -> vector<8x512xf32>
    %258 = arith.addf %254, %257 : vector<8x512xf32>
    %259 = vector.extract_strided_slice %258 {offsets = [0, 0], sizes = [8, 128], strides = [1, 1]} : vector<8x512xf32> to vector<8x128xf32>
    %260 = arith.negf %259 : vector<8x128xf32>
    %261 = math.exp %260 : vector<8x128xf32>
    %cst_90 = arith.constant 1.000000e+00 : f32
    %262 = vector.broadcast %cst_90 : f32 to vector<8x128xf32>
    %263 = arith.addf %262, %261 : vector<8x128xf32>
    %264 = arith.divf %262, %263 : vector<8x128xf32>
    %265 = vector.extract_strided_slice %258 {offsets = [0, 128], sizes = [8, 128], strides = [1, 1]} : vector<8x512xf32> to vector<8x128xf32>
    %266 = arith.negf %265 : vector<8x128xf32>
    %267 = math.exp %266 : vector<8x128xf32>
    %cst_91 = arith.constant 1.000000e+00 : f32
    %268 = vector.broadcast %cst_91 : f32 to vector<8x128xf32>
    %269 = arith.addf %268, %267 : vector<8x128xf32>
    %270 = arith.divf %268, %269 : vector<8x128xf32>
    %271 = vector.extract_strided_slice %258 {offsets = [0, 256], sizes = [8, 128], strides = [1, 1]} : vector<8x512xf32> to vector<8x128xf32>
    %272 = math.tanh %271 : vector<8x128xf32>
    %273 = vector.extract_strided_slice %258 {offsets = [0, 384], sizes = [8, 128], strides = [1, 1]} : vector<8x512xf32> to vector<8x128xf32>
    %274 = arith.negf %273 : vector<8x128xf32>
    %275 = math.exp %274 : vector<8x128xf32>
    %cst_92 = arith.constant 1.000000e+00 : f32
    %276 = vector.broadcast %cst_92 : f32 to vector<8x128xf32>
    %277 = arith.addf %276, %275 : vector<8x128xf32>
    %278 = arith.divf %276, %277 : vector<8x128xf32>
    %279 = arith.mulf %270, %246 : vector<8x128xf32>
    %280 = arith.mulf %264, %272 : vector<8x128xf32>
    %281 = arith.addf %279, %280 : vector<8x128xf32>
    %282 = math.tanh %281 : vector<8x128xf32>
    %283 = arith.mulf %278, %282 : vector<8x128xf32>
    %284 = arith.truncf %283 : vector<8x128xf32> to vector<8x128xbf16>
    %285 = vector.extract_strided_slice %284 {offsets = [0, 0], sizes = [8, 64], strides = [1, 1]} : vector<8x128xbf16> to vector<8x64xbf16>
    %c56_93 = arith.constant 56 : index
    %c0_94 = arith.constant 0 : index
    %286 = vector.load %arg8[%c56_93, %c0_94] : memref<64x128xbf16, #tpu.memory_space<vmem>>, vector<8x64xbf16>
    tpu.vector_store %arg8[%c56_93, %c0_94], %285 {strides = array<i32>} : memref<64x128xbf16, #tpu.memory_space<vmem>>, vector<8x64xbf16>,
    %287 = vector.extract_strided_slice %284 {offsets = [0, 64], sizes = [8, 64], strides = [1, 1]} : vector<8x128xbf16> to vector<8x64xbf16>
    %c0_95 = arith.constant 0 : index
    %c64_96 = arith.constant 64 : index
    %288 = vector.load %arg8[%c0_95, %c64_96] : memref<64x128xbf16, #tpu.memory_space<vmem>>, vector<8x64xbf16>
    tpu.vector_store %arg8[%c0_95, %c64_96], %287 {strides = array<i32>} : memref<64x128xbf16, #tpu.memory_space<vmem>>, vector<8x64xbf16>,
    %c0_97 = arith.constant 0 : index
    %c0_98 = arith.constant 0 : index
    %289 = vector.load %arg8[%c0_97, %c0_98] : memref<64x128xbf16, #tpu.memory_space<vmem>>, vector<64x128xbf16>
    %c0_99 = arith.constant 0 : index
    %c0_100 = arith.constant 0 : index
    %290 = vector.load %arg4[%c0_99, %c0_100] : memref<128x128xbf16, #tpu.memory_space<vmem>>, vector<128x128xbf16>
    %cst_101 = arith.constant dense<0.000000e+00> : vector<64x128xf32>
    %291 = tpu.matmul %289, %290, %cst_101 {dimension_numbers = #tpu.dot_dimension_numbers<[1], [0], [0], [1], [0, 0, 1, 1], [], []>} : vector<64x128xbf16>, vector<128x128xbf16>, vector<64x128xf32> -> vector<64x128xf32>
    %c0_102 = arith.constant 0 : index
    %c0_103 = arith.constant 0 : index
    %292 = vector.load %arg5[%c0_102, %c0_103] : memref<1x128xf32, #tpu.memory_space<vmem>>, vector<1x128xf32>
    %293 = vector.broadcast %292 : vector<1x128xf32> to vector<64x128xf32>
    %294 = arith.addf %291, %293 : vector<64x128xf32>
    %c0_104 = arith.constant 0 : index
    %c0_105 = arith.constant 0 : index
    %295 = vector.load %arg6[%c0_104, %c0_105] : memref<64x128xf32, #tpu.memory_space<vmem>>, vector<64x128xf32>
    tpu.vector_store %arg6[%c0_104, %c0_105], %294 {strides = array<i32>} : memref<64x128xf32, #tpu.memory_space<vmem>>, vector<64x128xf32>,
    return
  }
}

</mosaic_0001>

<bundles_post_ra>
// kernel: tpu_custom_call.1
= control target key start
LH: loop header
LB: loop body
LE: loop exit
PB: predicated region body
PF: predicated region fallthrough
CT: control target
= control target key end

     0   :  { %11 = vsyncpa [#allocation5], 0  ;;  %s4942_s0 = inlined_call_operand.hbm [shape: bf16[64,256], index: 0, kind: input, shape index: {}]   ;;  %s4943_s1 = inlined_call_operand.hbm [shape: bf16[256,512], index: 1, kind: input, shape index: {}]   ;;  %s4944_s2 = inlined_call_operand.vmem [shape: f32[1,512], index: 2, kind: input, shape index: {}]   ;;  %s4945_s3 = inlined_call_operand.hbm [shape: bf16[128,512], index: 3, kind: input, shape index: {}]   ;;  %s4946_s4 = inlined_call_operand.hbm [shape: bf16[128,128], index: 4, kind: input, shape index: {}]   ;;  %s4947_s5 = inlined_call_operand.vmem [shape: f32[1,128], index: 5, kind: input, shape index: {}]   ;;  %s4948_s6 = inlined_call_operand.hbm [shape: f32[64,128], index: 6, kind: output, shape index: {}]  }
   0x1   :  { %12 = vsyncpa [#allocation8], 0 }
   0x2   :  { %13 = vsyncpa [#allocation11], 0 }
   0x3   :  { %14 = vsyncpa [#allocation6], 0  ;;  %s4270_s21 = smov [#allocation7]   ;;  %s4152_s25 = scalar_lea.hbm %s4943_s1, 8192 }
   0x4   :  { %s32_s22 = sshll.u32 %s4270_s21, 4  ;;  %p4153_p0 = scmp.ne.s32.totalorder %s4943_s1, %s4152_s25  ;;  %s33_s22 = int_to_ptr.vmem [resolvable:$true] %s32_s22 }
   0x5   :  { %p4156_p1 = scmp.lt.u32.totalorder %s4152_s25, %s4943_s1 }
   0x7   :  { %p4158_p2 = pnand %p4156_p1, %p4153_p0 }
   0x9   :  { %4161 = shalt.err (!%p4158_p2)
}
   0xa   :  { %s4162_s30 = scalar_lea.vmem %s33_s22, 8192  ;;  %p4167_p4 = scmp.lt.s32.totalorder %s33_s22, %s33_s22 }
   0xb   :  { %p4163_p3 = scmp.ne.s32.totalorder %s33_s22, %s4162_s30  ;;  %p4168_p5 = scmp.lt.s32.totalorder %s4162_s30, %s4162_s30 }
   0xd   :  { %p4169_p6 = por %p4168_p5, %p4167_p4 }
   0xf   :  { %p4170_p7 = pnand %p4169_p6, %p4163_p3 }
  0x11   :  { %4173 = shalt.err (!%p4170_p7)
}
  0x12   :  { %s4271_s7 = smov 256   ;;  %s4272_s8 = smov 16  }
  0x13   :  { %38 = dma.hbm_to_vmem [thread:$0]  %s4943_s1, 8192, %s33_s22, [#allocation8], %s4271_s7, %s4271_s7, %s4272_s8  }
  0x14   :  { %s4273_s11 = smov [#allocation4]   ;;  %s4174_s15 = scalar_lea.hbm %s4942_s0, 1024 }
  0x15   :  { %s20_s12 = sshll.u32 %s4273_s11, 4  ;;  %p4175_p8 = scmp.ne.s32.totalorder %s4942_s0, %s4174_s15  ;;  %s21_s12 = int_to_ptr.vmem [resolvable:$true] %s20_s12 }
  0x16   :  { %p4178_p9 = scmp.lt.u32.totalorder %s4174_s15, %s4942_s0 }
  0x18   :  { %p4180_p10 = pnand %p4178_p9, %p4175_p8 }
  0x1a   :  { %4183 = shalt.err (!%p4180_p10)
}
  0x1b   :  { %s4184_s20 = scalar_lea.vmem %s21_s12, 1024  ;;  %p4189_p12 = scmp.lt.s32.totalorder %s21_s12, %s21_s12 }
  0x1c   :  { %p4185_p11 = scmp.ne.s32.totalorder %s21_s12, %s4184_s20  ;;  %p4190_p13 = scmp.lt.s32.totalorder %s4184_s20, %s4184_s20 }
  0x1e   :  { %p4191_p0 = por %p4190_p13, %p4189_p12 }
  0x20   :  { %p4192_p1 = pnand %p4191_p0, %p4185_p11 }
  0x22   :  { %4195 = shalt.err (!%p4192_p1)
}
  0x23   :  { %s4274_s1 = smov 128   ;;  %s4275_s21 = smov 8  }
  0x24   :  { %26 = dma.hbm_to_vmem [thread:$0]  %s4942_s0, 1024, %s21_s12, [#allocation5], %s4274_s1, %s4274_s1, %s4275_s21  }
  0x25   :  { %s4276_s24 = smov [#allocation9]   ;;  %s4277_s26 = smov [#allocation10]  }
  0x26   :  { %s46_s25 = sshll.u32 %s4276_s24, 4  ;;  %s58_s27 = sshll.u32 %s4277_s26, 4  ;;  %s47_s25 = int_to_ptr.vmem [resolvable:$true] %s46_s25  ;;  %s4347_s27 = int_to_ptr.vmem [resolvable:$true] %s58_s27 }
  0x27   :  { %s4196_s30 = scalar_lea.hbm %s4945_s3, 4096 }
  0x28   :  { %p4197_p2 = scmp.ne.s32.totalorder %s4945_s3, %s4196_s30  ;;  %p4200_p3 = scmp.lt.u32.totalorder %s4196_s30, %s4945_s3 }
  0x2a   :  { %p4202_p4 = pnand %p4200_p3, %p4197_p2 }
  0x2c   :  { %4205 = shalt.err (!%p4202_p4)
}
  0x2d   :  { %s4206_s0 = scalar_lea.vmem %s47_s25, 4096  ;;  %p4211_p6 = scmp.lt.s32.totalorder %s47_s25, %s47_s25 }
  0x2e   :  { %p4207_p5 = scmp.ne.s32.totalorder %s47_s25, %s4206_s0  ;;  %p4212_p7 = scmp.lt.s32.totalorder %s4206_s0, %s4206_s0 }
  0x30   :  { %p4213_p8 = por %p4212_p7, %p4211_p6 }
  0x32   :  { %p4214_p9 = pnand %p4213_p8, %p4207_p5 }
  0x34   :  { %4217 = shalt.err (!%p4214_p9)
}
  0x35   :  { %52 = dma.hbm_to_vmem [thread:$0]  %s4945_s3, 4096, %s47_s25, [#allocation8], %s4271_s7, %s4271_s7, %s4272_s8  }
  0x36   :  { %s4218_s17 = scalar_lea.hbm %s4946_s4, 1024 }
  0x37   :  { %p4219_p10 = scmp.ne.s32.totalorder %s4946_s4, %s4218_s17  ;;  %p4222_p11 = scmp.lt.u32.totalorder %s4218_s17, %s4946_s4 }
  0x39   :  { %p4224_p12 = pnand %p4222_p11, %p4219_p10 }
  0x3b   :  { %4227 = shalt.err (!%p4224_p12)
}
  0x3c   :  { %s4228_s23 = scalar_lea.vmem %s4347_s27, 1024  ;;  %p4233_p0 = scmp.lt.s32.totalorder %s4347_s27, %s4347_s27 }
  0x3d   :  { %p4229_p13 = scmp.ne.s32.totalorder %s4347_s27, %s4228_s23  ;;  %p4234_p1 = scmp.lt.s32.totalorder %s4228_s23, %s4228_s23 }
  0x3f   :  { %p4235_p2 = por %p4234_p1, %p4233_p0 }
  0x41   :  { %p4236_p3 = pnand %p4235_p2, %p4229_p13 }
  0x43   :  { %4239 = shalt.err (!%p4236_p3)
}
  0x44   :  { %s4278_s3 = smov 64   ;;  %s4279_s7 = smov 4  }
  0x45   :  { %64 = dma.hbm_to_vmem [thread:$0]  %s4946_s4, 1024, %s4347_s27, [#allocation11], %s4278_s3, %s4278_s3, %s4279_s7  }
  0x46   :  { %4262 = dma.done.wait [#allocation5], 1024  }
  0x47   :  { %4263 = vsyncadd [#allocation5], 4294966272 }
  0x48   :  { %4264 = dma.done.wait [#allocation8], 12288  }
  0x49   :  { %4265 = vsyncadd [#allocation8], 4294955008 }
  0x4a   :  { %4266 = dma.done.wait [#allocation11], 1024  }
  0x4b   :  { %4267 = vsyncadd [#allocation11], 4294966272  ;;  %v3788_v0 = vld [vmem:[#allocation7 + $0xc] ss:$16 sps:$4 sm:$0xff]   ;;  %v3790_v1 = vld [vmem:[#allocation7 + $0x8] ss:$16 sps:$4 sm:$0xff]  }
  0x4c   :  { %607 = vmatprep.subr.bf16.mxu1 %v3788_v0  ;;  %v3791_v2 = vld [vmem:[#allocation7 + $0x2c] ss:$16 sps:$4 sm:$0xff]   ;;  %v3793_v3 = vld [vmem:[#allocation7 + $0x28] ss:$16 sps:$4 sm:$0xff]   ;;  %v3812_v8 = vld [vmem:[#allocation7 + $0x4] ss:$16 sps:$4 sm:$0xff]  }
  0x4d   :  { %608 = vmatpush1.bf16.msra.mxu1 %v3790_v1  ;;  %v3794_v4 = vld [vmem:[#allocation7 + $0x4c] ss:$16 sps:$4 sm:$0xff]   ;;  %v3796_v5 = vld [vmem:[#allocation7 + $0x48] ss:$16 sps:$4 sm:$0xff]   ;;  %v3814_v9 = vld [vmem:[#allocation7] ss:$16 sps:$4 sm:$0xff]   ;;  %534 = vmatprep.subr.bf16.mxu0 %v3812_v8 }
  0x4e   :  { %609 = vmatprep.subr.bf16.mxu1 %v3791_v2  ;;  %v3797_v6 = vld [vmem:[#allocation7 + $0x6c] ss:$16 sps:$4 sm:$0xff]   ;;  %v3799_v7 = vld [vmem:[#allocation7 + $0x68] ss:$16 sps:$4 sm:$0xff]   ;;  %535 = vmatpush1.bf16.msra.mxu0 %v3814_v9  ;;  %v3818_v11 = vld [vmem:[#allocation7 + $0x24] ss:$16 sps:$4 sm:$0xff]  }
  0x4f   :  { %v3800_v10 = vld [vmem:[#allocation7 + $0x8c] ss:$16 sps:$4 sm:$0xff]   ;;  %v3820_v12 = vld [vmem:[#allocation7 + $0x20] ss:$16 sps:$4 sm:$0xff]   ;;  %v3802_v13 = vld [vmem:[#allocation7 + $0x88] ss:$16 sps:$4 sm:$0xff]   ;;  %536 = vmatprep.subr.bf16.mxu0 %v3818_v11 }
  0x50   :  { %v3803_v14 = vld [vmem:[#allocation7 + $0xac] ss:$16 sps:$4 sm:$0xff]   ;;  %v3824_v15 = vld [vmem:[#allocation7 + $0x44] ss:$16 sps:$4 sm:$0xff]   ;;  %v3826_v16 = vld [vmem:[#allocation7 + $0x40] ss:$16 sps:$4 sm:$0xff]  }
  0x51   :  { %610 = vmatpush1.bf16.msra.mxu1 %v3793_v3  ;;  %v3805_v17 = vld [vmem:[#allocation7 + $0xa8] ss:$16 sps:$4 sm:$0xff]   ;;  %v3830_v18 = vld [vmem:[#allocation7 + $0x64] ss:$16 sps:$4 sm:$0xff]   ;;  %v3806_v19 = vld [vmem:[#allocation7 + $0xcc] ss:$16 sps:$4 sm:$0xff]  }
  0x52   :  { %611 = vmatprep.subr.bf16.mxu1 %v3794_v4  ;;  %537 = vmatpush1.bf16.msra.mxu0 %v3820_v12  ;;  %v3832_v20 = vld [vmem:[#allocation7 + $0x60] ss:$16 sps:$4 sm:$0xff]   ;;  %v3808_v21 = vld [vmem:[#allocation7 + $0xc8] ss:$16 sps:$4 sm:$0xff]   ;;  %v3836_v22 = vld [vmem:[#allocation7 + $0x84] ss:$16 sps:$4 sm:$0xff]  }
  0x53   :  { %538 = vmatprep.subr.bf16.mxu0 %v3824_v15  ;;  %v3809_v23 = vld [vmem:[#allocation7 + $0xec] ss:$16 sps:$4 sm:$0xff]   ;;  %v3838_v24 = vld [vmem:[#allocation7 + $0x80] ss:$16 sps:$4 sm:$0xff]   ;;  %v3811_v25 = vld [vmem:[#allocation7 + $0xe8] ss:$16 sps:$4 sm:$0xff]  }
  0x54   :  { %v3842_v26 = vld [vmem:[#allocation7 + $0xa4] ss:$16 sps:$4 sm:$0xff]   ;;  %v3815_v27 = vld [vmem:[#allocation7 + $0x10c] ss:$16 sps:$4 sm:$0xff]   ;;  %v3844_v28 = vld [vmem:[#allocation7 + $0xa0] ss:$16 sps:$4 sm:$0xff]  }
  0x55   :  { %612 = vmatpush1.bf16.msra.mxu1 %v3796_v5  ;;  %v3817_v29 = vld [vmem:[#allocation7 + $0x108] ss:$16 sps:$4 sm:$0xff]   ;;  %v3848_v30 = vld [vmem:[#allocation7 + $0xc4] ss:$16 sps:$4 sm:$0xff]   ;;  %v3821_v31 = vld [vmem:[#allocation7 + $0x12c] ss:$16 sps:$4 sm:$0xff]  }
  0x56   :  { %613 = vmatprep.subr.bf16.mxu1 %v3797_v6  ;;  %539 = vmatpush1.bf16.msra.mxu0 %v3826_v16  ;;  %v3850_v32 = vld [vmem:[#allocation7 + $0xc0] ss:$16 sps:$4 sm:$0xff]   ;;  %v3865_v33 = vld [vmem:[#allocation4 + $0x4] ss:$8 sps:$4 sm:$0xff]   ;;  %v3823_v34 = vld [vmem:[#allocation7 + $0x128] ss:$16 sps:$4 sm:$0xff]  }
  0x57   :  { %540 = vmatprep.subr.bf16.mxu0 %v3830_v18  ;;  %v3854_v35 = vld [vmem:[#allocation7 + $0xe4] ss:$16 sps:$4 sm:$0xff]   ;;  %v3827_v36 = vld [vmem:[#allocation7 + $0x14c] ss:$16 sps:$4 sm:$0xff]   ;;  %639 = vmatprep.mubr.bf16.mxu1 %v3865_v33  ;;  %v3856_v37 = vld [vmem:[#allocation7 + $0xe0] ss:$16 sps:$4 sm:$0xff]  }
  0x58   :  { %566 = vmatprep.mubr.bf16.mxu0 %v3865_v33  ;;  %v3829_v38 = vld [vmem:[#allocation7 + $0x148] ss:$16 sps:$4 sm:$0xff]   ;;  %v3860_v39 = vld [vmem:[#allocation7 + $0x104] ss:$16 sps:$4 sm:$0xff]   ;;  %v3833_v40 = vld [vmem:[#allocation7 + $0x16c] ss:$16 sps:$4 sm:$0xff]  }
  0x59   :  { %614 = vmatpush1.bf16.msra.mxu1 %v3799_v7  ;;  %v3862_v41 = vld [vmem:[#allocation7 + $0x100] ss:$16 sps:$4 sm:$0xff]   ;;  %v3835_v42 = vld [vmem:[#allocation7 + $0x168] ss:$16 sps:$4 sm:$0xff]   ;;  %v3869_v43 = vld [vmem:[#allocation7 + $0x124] ss:$16 sps:$4 sm:$0xff]  }
  0x5a   :  { %615 = vmatprep.subr.bf16.mxu1 %v3800_v10  ;;  %541 = vmatpush1.bf16.msra.mxu0 %v3832_v20  ;;  %v3839_v44 = vld [vmem:[#allocation7 + $0x18c] ss:$16 sps:$4 sm:$0xff]   ;;  %v3871_v45 = vld [vmem:[#allocation7 + $0x120] ss:$16 sps:$4 sm:$0xff]   ;;  %v3841_v46 = vld [vmem:[#allocation7 + $0x188] ss:$16 sps:$4 sm:$0xff]  }
  0x5b   :  { %542 = vmatprep.subr.bf16.mxu0 %v3836_v22  ;;  %v3875_v47 = vld [vmem:[#allocation7 + $0x144] ss:$16 sps:$4 sm:$0xff]   ;;  %v3845_v48 = vld [vmem:[#allocation7 + $0x1ac] ss:$16 sps:$4 sm:$0xff]   ;;  %v3877_v49 = vld [vmem:[#allocation7 + $0x140] ss:$16 sps:$4 sm:$0xff]  }
  0x5c   :  { %v3847_v50 = vld [vmem:[#allocation7 + $0x1a8] ss:$16 sps:$4 sm:$0xff]   ;;  %v3884_v51 = vld [vmem:[#allocation7 + $0x164] ss:$16 sps:$4 sm:$0xff]   ;;  %v3851_v52 = vld [vmem:[#allocation7 + $0x1cc] ss:$16 sps:$4 sm:$0xff]  }
  0x5d   :  { %616 = vmatpush1.bf16.msra.mxu1 %v3802_v13  ;;  %v3886_v53 = vld [vmem:[#allocation7 + $0x160] ss:$16 sps:$4 sm:$0xff]   ;;  %v3853_v54 = vld [vmem:[#allocation7 + $0x1c8] ss:$16 sps:$4 sm:$0xff]   ;;  %v3890_v55 = vld [vmem:[#allocation7 + $0x184] ss:$16 sps:$4 sm:$0xff]  }
  0x5e   :  { %617 = vmatprep.subr.bf16.mxu1 %v3803_v14  ;;  %543 = vmatpush1.bf16.msra.mxu0 %v3838_v24  ;;  %v3857_v56 = vld [vmem:[#allocation7 + $0x1ec] ss:$16 sps:$4 sm:$0xff]   ;;  %v3892_v57 = vld [vmem:[#allocation7 + $0x180] ss:$16 sps:$4 sm:$0xff]   ;;  %v3859_v58 = vld [vmem:[#allocation7 + $0x1e8] ss:$16 sps:$4 sm:$0xff]  }
  0x5f   :  { %544 = vmatprep.subr.bf16.mxu0 %v3842_v26  ;;  %v3899_v59 = vld [vmem:[#allocation7 + $0x1a4] ss:$16 sps:$4 sm:$0xff]   ;;  %v3863_v61 = vld [vmem:[#allocation4] ss:$8 sps:$4 sm:$0xff]   ;;  %v3880_v6 = vld [vmem:[#allocation4 + $0x10] ss:$8 sps:$4 sm:$0xff]  }
  0x60   :  { %v4381_v60 = vld [vmem:[#allocation9 + $0x4] ss:$16 sps:$4 sm:$0xff]   ;;  %v4383_v62 = vld [vmem:[#allocation9] ss:$16 sps:$4 sm:$0xff]   ;;  %v4949_v24 = vmov 0   ;;  %vm1019_vm0 = vcmask 519168  }
  0x61   :  { %618 = vmatpush1.bf16.msra.mxu1 %v3805_v17  ;;  %v3901_v63 = vld [vmem:[#allocation7 + $0x1a0] ss:$16 sps:$4 sm:$0xff]   ;;  %v4385_v0 = vld [vmem:[#allocation9 + $0x24] ss:$16 sps:$4 sm:$0xff]   ;;  %v4442_v26 = vld [vmem:[#allocation9 + $0x8] ss:$16 sps:$4 sm:$0xff]  }
  0x62   :  { %619 = vmatprep.subr.bf16.mxu1 %v3806_v19  ;;  %545 = vmatpush1.bf16.msra.mxu0 %v3844_v28  ;;  %v3878_v1 = vld [vmem:[#allocation4 + $0x14] ss:$8 sps:$4 sm:$0xff]   ;;  %v3907_v3 = vld [vmem:[#allocation7 + $0x1c0] ss:$16 sps:$4 sm:$0xff]   ;;  %v3893_v9 = vld [vmem:[#allocation4 + $0x24] ss:$8 sps:$4 sm:$0xff]  }
  0x63   :  { %546 = vmatprep.subr.bf16.mxu0 %v3848_v30  ;;  %v3905_v2 = vld [vmem:[#allocation7 + $0x1c4] ss:$16 sps:$4 sm:$0xff]   ;;  %v4389_v4 = vld [vmem:[#allocation9 + $0x20] ss:$16 sps:$4 sm:$0xff]   ;;  %v4451_v28 = vld [vmem:[#allocation9 + $0x28] ss:$16 sps:$4 sm:$0xff]  }
  0x64   :  { %v3914_v5 = vld [vmem:[#allocation7 + $0x1e4] ss:$16 sps:$4 sm:$0xff]   ;;  %v4394_v8 = vld [vmem:[#allocation9 + $0x40] ss:$16 sps:$4 sm:$0xff]   ;;  %v4461_v30 = vld [vmem:[#allocation9 + $0x48] ss:$16 sps:$4 sm:$0xff]  }
  0x65   :  { %620 = vmatpush1.bf16.msra.mxu1 %v3808_v21  ;;  %v4392_v7 = vld [vmem:[#allocation9 + $0x44] ss:$16 sps:$4 sm:$0xff]   ;;  %v3916_v10 = vld [vmem:[#allocation7 + $0x1e0] ss:$16 sps:$4 sm:$0xff]   ;;  %v4473_v33 = vld [vmem:[#allocation9 + $0x8c] ss:$16 sps:$4 sm:$0xff]  }
  0x66   :  { %621 = vmatprep.subr.bf16.mxu1 %v3809_v23  ;;  %547 = vmatpush1.bf16.msra.mxu0 %v3850_v32  ;;  %v4396_v11 = vld [vmem:[#allocation9 + $0x64] ss:$16 sps:$4 sm:$0xff]   ;;  %v4400_v12 = vld [vmem:[#allocation9 + $0x60] ss:$16 sps:$4 sm:$0xff]   ;;  %v4469_v32 = vld [vmem:[#allocation9 + $0x68] ss:$16 sps:$4 sm:$0xff]  }
  0x67   :  { %548 = vmatprep.subr.bf16.mxu0 %v3854_v35  ;;  %v4402_v13 = vld [vmem:[#allocation9 + $0x84] ss:$16 sps:$4 sm:$0xff]   ;;  %v3895_v14 = vld [vmem:[#allocation4 + $0x20] ss:$8 sps:$4 sm:$0xff]   ;;  %v3910_v20 = vld [vmem:[#allocation4 + $0x30] ss:$8 sps:$4 sm:$0xff]  }
  0x68   :  { %v4407_v15 = vld [vmem:[#allocation9 + $0x80] ss:$16 sps:$4 sm:$0xff]   ;;  %v3908_v16 = vld [vmem:[#allocation4 + $0x34] ss:$8 sps:$4 sm:$0xff]   ;;  %vm1024_vm1 = vcmask 1048068   ;;  %vm1338_vm2 = vcmask 1043968  }
  0x69   :  { %622 = vmatpush1.bf16.msra.mxu1 %v3811_v25  ;;  %v4409_v17 = vld [vmem:[#allocation9 + $0xa4] ss:$16 sps:$4 sm:$0xff]   ;;  %v4415_v18 = vld [vmem:[#allocation9 + $0xa0] ss:$16 sps:$4 sm:$0xff]   ;;  %v4437_v25 = vld [vmem:[#allocation9 + $0xc] ss:$16 sps:$4 sm:$0xff]  }
  0x6a   :  { %623 = vmatprep.subr.bf16.mxu1 %v3815_v27  ;;  %549 = vmatpush1.bf16.msra.mxu0 %v3856_v37  ;;  %v4417_v19 = vld [vmem:[#allocation9 + $0xc4] ss:$16 sps:$4 sm:$0xff]   ;;  %v4423_v21 = vld [vmem:[#allocation9 + $0xc0] ss:$16 sps:$4 sm:$0xff]   ;;  %v4446_v27 = vld [vmem:[#allocation9 + $0x2c] ss:$16 sps:$4 sm:$0xff]  }
  0x6b   :  { %550 = vmatprep.subr.bf16.mxu0 %v3860_v39  ;;  %v4425_v22 = vld [vmem:[#allocation9 + $0xe4] ss:$16 sps:$4 sm:$0xff]   ;;  %v4433_v23 = vld [vmem:[#allocation9 + $0xe0] ss:$16 sps:$4 sm:$0xff]   ;;  %v4479_v35 = vld [vmem:[#allocation9 + $0xac] ss:$16 sps:$4 sm:$0xff]  }
  0x6c   :  { %v4485_v37 = vld [vmem:[#allocation9 + $0xcc] ss:$16 sps:$4 sm:$0xff]   ;;  %vm1336_vm3 = vcmask 523268   ;;  %s4281_s27 = smov [#allocation12]  }
  0x6d   :  { %624 = vmatpush1.bf16.msra.mxu1 %v3817_v29  ;;  %v4455_v29 = vld [vmem:[#allocation9 + $0x4c] ss:$16 sps:$4 sm:$0xff]   ;;  %s3365_s28 = sshll.u32 %s4281_s27, 4  ;;  %s3366_s28 = int_to_ptr.vmem [resolvable:$true] %s3365_s28 }
  0x6e   :  { %625 = vmatprep.subr.bf16.mxu1 %v3821_v31  ;;  %551 = vmatpush1.bf16.msra.mxu0 %v3862_v41  ;;  %v4465_v31 = vld [vmem:[#allocation9 + $0x6c] ss:$16 sps:$4 sm:$0xff]   ;;  %v154_v41 = vlaneseq  ;;  %p4245_p5 = scmp.lt.s32.totalorder %s3366_s28, %s3366_s28 }
  0x6f   :  { %552 = vmatprep.subr.bf16.mxu0 %v3869_v43  ;;  %v4491_v39 = vld [vmem:[#allocation9 + $0xec] ss:$16 sps:$4 sm:$0xff]  }
  0x71   :  { %626 = vmatpush1.bf16.msra.mxu1 %v3823_v34  ;;  %v4476_v34 = vld [vmem:[#allocation9 + $0x88] ss:$16 sps:$4 sm:$0xff]  }
  0x72   :  { %627 = vmatprep.subr.bf16.mxu1 %v3827_v36  ;;  %553 = vmatpush1.bf16.msra.mxu0 %v3871_v45  ;;  %v4482_v36 = vld [vmem:[#allocation9 + $0xa8] ss:$16 sps:$4 sm:$0xff]  }
  0x73   :  { %554 = vmatprep.subr.bf16.mxu0 %v3875_v47 }
  0x75   :  { %628 = vmatpush1.bf16.msra.mxu1 %v3829_v38  ;;  %v4488_v38 = vld [vmem:[#allocation9 + $0xc8] ss:$16 sps:$4 sm:$0xff]  }
  0x76   :  { %629 = vmatprep.subr.bf16.mxu1 %v3833_v40  ;;  %555 = vmatpush1.bf16.msra.mxu0 %v3877_v49  ;;  %v4494_v40 = vld [vmem:[#allocation9 + $0xe8] ss:$16 sps:$4 sm:$0xff]  }
  0x77   :  { %556 = vmatprep.subr.bf16.mxu0 %v3884_v51 }
  0x79   :  { %630 = vmatpush1.bf16.msra.mxu1 %v3835_v42  ;;  %v155_v42 = vshrl.u32 %v154_v41, 7 }
  0x7a   :  { %631 = vmatprep.subr.bf16.mxu1 %v3839_v44  ;;  %557 = vmatpush1.bf16.msra.mxu0 %v3886_v53  ;;  %v152_v44 = vld [vmem:[%s4944_s2] sm:$0xf] }
  0x7b   :  { %558 = vmatprep.subr.bf16.mxu0 %v3890_v55  ;;  %v164_v43 = vsub.s32 2, %v155_v42  ;;  %v168_v45 = vsub.s32 3, %v155_v42  ;;  %v156_v55 = vsub.s32 0, %v155_v42 }
  0x7d   :  { %632 = vmatpush1.bf16.msra.mxu1 %v3841_v46  ;;  %v4520_v46 = vrot.slane %v152_v44, %v164_v43  ;;  %v4526_v49 = vrot.slane %v152_v44, %v168_v45 }
  0x7e   :  { %633 = vmatprep.subr.bf16.mxu1 %v3845_v48  ;;  %559 = vmatpush1.bf16.msra.mxu0 %v3892_v57 }
  0x7f   :  { %560 = vmatprep.subr.bf16.mxu0 %v3899_v59 }
  0x81   :  { %634 = vmatpush1.bf16.msra.mxu1 %v3847_v50 }
  0x82   :  { %635 = vmatprep.subr.bf16.mxu1 %v3851_v52  ;;  %561 = vmatpush1.bf16.msra.mxu0 %v3901_v63 }
  0x83   :  { %562 = vmatprep.subr.bf16.mxu0 %v3905_v2 }
  0x85   :  { %636 = vmatpush1.bf16.msra.mxu1 %v3853_v54 }
  0x86   :  { %637 = vmatprep.subr.bf16.mxu1 %v3857_v56  ;;  %563 = vmatpush1.bf16.msra.mxu0 %v3907_v3  ;;  %v157_v3 = vrot.slane %v152_v44, %v156_v55 }
  0x87   :  { %564 = vmatprep.subr.bf16.mxu0 %v3914_v5 }
  0x89   :  { %638 = vmatpush1.bf16.msra.mxu1 %v3859_v58  ;;  %v160_v58 = vsub.s32 1, %v155_v42 }
  0x8a   :  { %908 = vmatprep.subr.bf16.mxu1 %v4381_v60  ;;  %565 = vmatpush1.bf16.msra.mxu0 %v3916_v10 }
  0x8b   :  { %1222 = vmatprep.subr.bf16.mxu0 %v4381_v60 }
  0x8c   :  { %640 = vmatmul.mubr.bf16.vlgmr.msra.gmra.mrb[0].mxu1 %v3863_v61 }
  0x8d   :  { %909 = vmatpush1.bf16.msra.mxu1 %v4383_v62  ;;  %649 = vmatprep.mubr.bf16.mxu1 %v3878_v1 }
  0x8e   :  { %910 = vmatprep.subr.bf16.mxu1 %v4385_v0  ;;  %567 = vmatmul.mubr.bf16.vlgmr.msra.gmra.mrb[0].mxu0 %v3863_v61 }
  0x8f   :  { %1223 = vmatpush1.bf16.msra.mxu0 %v4383_v62  ;;  %576 = vmatprep.mubr.bf16.mxu0 %v3878_v1 }
  0x90   :  { %1224 = vmatprep.subr.bf16.mxu0 %v4385_v0 }
  0x91   :  { %911 = vmatpush1.bf16.msra.mxu1 %v4389_v4 }
  0x92   :  { %912 = vmatprep.subr.bf16.mxu1 %v4392_v7 }
  0x93   :  { %1225 = vmatpush1.bf16.msra.mxu0 %v4389_v4 }
  0x94   :  { %650 = vmatmul.mubr.bf16.gmra.mrb[4].mxu1 %v3880_v6  ;;  %1226 = vmatprep.subr.bf16.mxu0 %v4392_v7 }
  0x95   :  { %913 = vmatpush1.bf16.msra.mxu1 %v4394_v8  ;;  %659 = vmatprep.mubr.bf16.mxu1 %v3893_v9 }
  0x96   :  { %914 = vmatprep.subr.bf16.mxu1 %v4396_v11  ;;  %577 = vmatmul.mubr.bf16.gmra.mrb[4].mxu0 %v3880_v6  ;;  %v161_v6 = vrot.slane %v152_v44, %v160_v58 }
  0x97   :  { %1227 = vmatpush1.bf16.msra.mxu0 %v4394_v8  ;;  %586 = vmatprep.mubr.bf16.mxu0 %v3893_v9 }
  0x98   :  { %1228 = vmatprep.subr.bf16.mxu0 %v4396_v11 }
  0x99   :  { %915 = vmatpush1.bf16.msra.mxu1 %v4400_v12 }
  0x9a   :  { %916 = vmatprep.subr.bf16.mxu1 %v4402_v13 }
  0x9b   :  { %1229 = vmatpush1.bf16.msra.mxu0 %v4400_v12 }
  0x9c   :  { %660 = vmatmul.mubr.bf16.gmra.mrb[8].mxu1 %v3895_v14  ;;  %1230 = vmatprep.subr.bf16.mxu0 %v4402_v13 }
  0x9d   :  { %917 = vmatpush1.bf16.msra.mxu1 %v4407_v15  ;;  %669 = vmatprep.mubr.bf16.mxu1 %v3908_v16 }
  0x9e   :  { %918 = vmatprep.subr.bf16.mxu1 %v4409_v17  ;;  %587 = vmatmul.mubr.bf16.gmra.mrb[8].mxu0 %v3895_v14 }
  0x9f   :  { %1231 = vmatpush1.bf16.msra.mxu0 %v4407_v15  ;;  %596 = vmatprep.mubr.bf16.mxu0 %v3908_v16 }
  0xa0   :  { %1232 = vmatprep.subr.bf16.mxu0 %v4409_v17 }
  0xa1   :  { %919 = vmatpush1.bf16.msra.mxu1 %v4415_v18 }
  0xa2   :  { %920 = vmatprep.subr.bf16.mxu1 %v4417_v19 }
  0xa3   :  { %1233 = vmatpush1.bf16.msra.mxu0 %v4415_v18 }
  0xa4   :  { %670 = vmatmul.mubr.bf16.gmra.mrb[12].mxu1 %v3910_v20  ;;  %1234 = vmatprep.subr.bf16.mxu0 %v4417_v19 }
  0xa5   :  { %921 = vmatpush1.bf16.msra.mxu1 %v4423_v21  ;;  %940 = vmatprep.mubr.bf16.mxu1 %v4949_v24 }
  0xa6   :  { %922 = vmatprep.subr.bf16.mxu1 %v4425_v22  ;;  %597 = vmatmul.mubr.bf16.gmra.mrb[12].mxu0 %v3910_v20 }
  0xa7   :  { %1235 = vmatpush1.bf16.msra.mxu0 %v4423_v21  ;;  %1254 = vmatprep.mubr.bf16.mxu0 %v4949_v24 }
  0xa8   :  { %1236 = vmatprep.subr.bf16.mxu0 %v4425_v22 }
  0xa9   :  { %923 = vmatpush1.bf16.msra.mxu1 %v4433_v23 }
  0xaa   :  { %949 = vmatprep.subr.bf16.mxu1 %v4437_v25 }
  0xab   :  { %1237 = vmatpush1.bf16.msra.mxu0 %v4433_v23 }
  0xac   :  { %941 = vmatmul.mubr.bf16.vlgmr.msra.gmra.mrb[16].mxu1 %v4949_v24  ;;  %1536 = vmatprep.subr.bf16.mxu0 %v4381_v60 }
  0xad   :  { %950 = vmatpush1.bf16.msra.mxu1 %v4442_v26  ;;  %981 = vmatprep.mubr.bf16.mxu1 %v4949_v24 }
  0xae   :  { %951 = vmatprep.subr.bf16.mxu1 %v4446_v27 }
  0xb1   :  { %952 = vmatpush1.bf16.msra.mxu1 %v4451_v28 }
  0xb2   :  { %953 = vmatprep.subr.bf16.mxu1 %v4455_v29 }
  0xb5   :  { %954 = vmatpush1.bf16.msra.mxu1 %v4461_v30 }
  0xb6   :  { %955 = vmatprep.subr.bf16.mxu1 %v4465_v31 }
  0xb9   :  { %956 = vmatpush1.bf16.msra.mxu1 %v4469_v32 }
  0xba   :  { %957 = vmatprep.subr.bf16.mxu1 %v4473_v33 }
  0xbd   :  { %958 = vmatpush1.bf16.msra.mxu1 %v4476_v34 }
  0xbe   :  { %959 = vmatprep.subr.bf16.mxu1 %v4479_v35 }
  0xc1   :  { %960 = vmatpush1.bf16.msra.mxu1 %v4482_v36 }
  0xc2   :  { %961 = vmatprep.subr.bf16.mxu1 %v4485_v37 }
  0xc5   :  { %962 = vmatpush1.bf16.msra.mxu1 %v4488_v38 }
  0xc6   :  { %963 = vmatprep.subr.bf16.mxu1 %v4491_v39 }
  0xc9   :  { %964 = vmatpush1.bf16.msra.mxu1 %v4494_v40 }
  0xca   :  { %1263 = vmatprep.subr.bf16.mxu1 %v4437_v25 }
  0xcc   :  { %982 = vmatmul.mubr.bf16.vlgmr.msra.gmra.mrb[20].mxu1 %v4949_v24 }
  0xcd   :  { %1264 = vmatpush1.bf16.msra.mxu1 %v4442_v26  ;;  %1295 = vmatprep.mubr.bf16.mxu1 %v4949_v24 }
  0xce   :  { %1265 = vmatprep.subr.bf16.mxu1 %v4446_v27 }
  0xd1   :  { %1266 = vmatpush1.bf16.msra.mxu1 %v4451_v28 }
  0xd2   :  { %1267 = vmatprep.subr.bf16.mxu1 %v4455_v29 }
  0xd5   :  { %1268 = vmatpush1.bf16.msra.mxu1 %v4461_v30 }
  0xd6   :  { %1269 = vmatprep.subr.bf16.mxu1 %v4465_v31 }
  0xd9   :  { %1270 = vmatpush1.bf16.msra.mxu1 %v4469_v32 }
  0xda   :  { %1271 = vmatprep.subr.bf16.mxu1 %v4473_v33 }
  0xdd   :  { %1272 = vmatpush1.bf16.msra.mxu1 %v4476_v34 }
  0xde   :  { %1273 = vmatprep.subr.bf16.mxu1 %v4479_v35 }
  0xe1   :  { %1274 = vmatpush1.bf16.msra.mxu1 %v4482_v36 }
  0xe2   :  { %1275 = vmatprep.subr.bf16.mxu1 %v4485_v37 }
  0xe5   :  { %1276 = vmatpush1.bf16.msra.mxu1 %v4488_v38 }
  0xe6   :  { %1277 = vmatprep.subr.bf16.mxu1 %v4491_v39 }
  0xe9   :  { %1278 = vmatpush1.bf16.msra.mxu1 %v4494_v40 }
  0xea   :  { %1577 = vmatprep.subr.bf16.mxu1 %v4437_v25 }
 0x15f   :  { %v4522_v47 = vpop.f32.mrb[0].mxu1 }
 0x160   :  { %v4524_v48 = vpop.f32.mrb[1].mxu1 }
 0x161   :  { %v645_v50 = vpop.f32.mrb[2].mxu1  ;;  %v568_v1 = vpop.f32.mrb[0].mxu0 }
 0x162   :  { %v4529_v51 = vadd.f32 %v645_v50, %v4520_v46  ;;  %v647_v52 = vpop.f32.mrb[3].mxu1  ;;  %v570_v5 = vpop.f32.mrb[1].mxu0 }
 0x163   :  { %v4532_v53 = vadd.f32 %v647_v52, %v4526_v49  ;;  %v572_v9 = vpop.f32.mrb[2].mxu0 }
 0x164   :  { %v4546_v10 = vadd.f32 %v572_v9, %v157_v3  ;;  %v574_v14 = vpop.f32.mrb[3].mxu0 }
 0x165   :  { %v4548_v16 = vadd.f32 %v574_v14, %v161_v6 }
 0x167   :  { %v651_v54 = vpop.f32.mrb[4].mxu1 }
 0x168   :  { %v4535_v56 = vadd.f32 %v651_v54, %v4520_v46  ;;  %v653_v57 = vpop.f32.mrb[5].mxu1 }
 0x169   :  { %v4538_v59 = vadd.f32 %v653_v57, %v4526_v49  ;;  %v655_v60 = vpop.f32.mrb[6].mxu1  ;;  %v578_v44 = vpop.f32.mrb[4].mxu0 }
 0x16a   :  { %v4541_v61 = vadd.f32 %v655_v60, %v4520_v46  ;;  %v657_v63 = vpop.f32.mrb[7].mxu1  ;;  %v4562_v55 = vadd.f32 %v578_v44, %v157_v3  ;;  %v580_v57 = vpop.f32.mrb[5].mxu0 }
 0x16b   :  { %v4544_v2 = vadd.f32 %v657_v63, %v4526_v49  ;;  %v4564_v58 = vadd.f32 %v580_v57, %v161_v6  ;;  %v582_v60 = vpop.f32.mrb[6].mxu0 }
 0x16c   :  { %4951 = vst [vmem:[#allocation17_spill] sm:$0xff] %v4541_v61  ;;  %v4566_v63 = vadd.f32 %v582_v60, %v157_v3  ;;  %v584_v9 = vpop.f32.mrb[7].mxu0 }
 0x16d   :  { %4952 = vst [vmem:[#allocation18_spill] sm:$0xff] %v4544_v2  ;;  %v4568_v14 = vadd.f32 %v584_v9, %v161_v6 }
 0x16e   :  { %4957 = vst [vmem:[#allocation23_spill] sm:$0xff] %v4566_v63 }
 0x16f   :  { %v661_v20 = vpop.f32.mrb[8].mxu1  ;;  %4958 = vst [vmem:[#allocation24_spill] sm:$0xff] %v4568_v14 }
 0x170   :  { %v4551_v41 = vadd.f32 %v661_v20, %v4520_v46  ;;  %v663_v42 = vpop.f32.mrb[9].mxu1 }
 0x171   :  { %v4554_v43 = vadd.f32 %v663_v42, %v4526_v49  ;;  %v665_v45 = vpop.f32.mrb[10].mxu1 }
 0x172   :  { %4953 = vst [vmem:[#allocation19_spill] sm:$0xff] %v4551_v41  ;;  %v4557_v50 = vadd.f32 %v665_v45, %v4520_v46  ;;  %v667_v52 = vpop.f32.mrb[11].mxu1 }
 0x173   :  { %4954 = vst [vmem:[#allocation20_spill] sm:$0xff] %v4554_v43  ;;  %v4560_v54 = vadd.f32 %v667_v52, %v4526_v49  ;;  %v569_v43 = vadd.f32 %v568_v1, %v157_v3 }
 0x174   :  { %4955 = vst [vmem:[#allocation21_spill] sm:$0xff] %v4557_v50 }
 0x175   :  { %4956 = vst [vmem:[#allocation22_spill] sm:$0xff] %v4560_v54  ;;  %v588_v54 = vpop.f32.mrb[8].mxu0 }
 0x176   :  { %v4582_v50 = vadd.f32 %v588_v54, %v157_v3  ;;  %v590_v9 = vpop.f32.mrb[9].mxu0 }
 0x177   :  { %v671_v20 = vpop.f32.mrb[12].mxu1  ;;  %v4584_v41 = vadd.f32 %v590_v9, %v161_v6 }
 0x178   :  { %v4571_v42 = vadd.f32 %v671_v20, %v4520_v46  ;;  %v673_v45 = vpop.f32.mrb[13].mxu1  ;;  %4963 = vst [vmem:[#allocation29_spill] sm:$0xff] %v4582_v50  ;;  %v592_v20 = vpop.f32.mrb[10].mxu0 }
 0x179   :  { %v4574_v24 = vadd.f32 %v673_v45, %v4526_v49  ;;  %v675_v52 = vpop.f32.mrb[14].mxu1  ;;  %4964 = vst [vmem:[#allocation30_spill] sm:$0xff] %v4584_v41  ;;  %v4586_v2 = vadd.f32 %v592_v20, %v157_v3  ;;  %v594_v45 = vpop.f32.mrb[11].mxu0 }
 0x17a   :  { %4959 = vst [vmem:[#allocation25_spill] sm:$0xff] %v4571_v42  ;;  %v4577_v44 = vadd.f32 %v675_v52, %v4520_v46  ;;  %v677_v57 = vpop.f32.mrb[15].mxu1  ;;  %v571_v42 = vadd.f32 %v570_v5, %v161_v6 }
 0x17b   :  { %4960 = vst [vmem:[#allocation26_spill] sm:$0xff] %v4574_v24  ;;  %v4580_v60 = vadd.f32 %v677_v57, %v4526_v49  ;;  %v4588_v24 = vadd.f32 %v594_v45, %v161_v6 }
 0x17c   :  { %4961 = vst [vmem:[#allocation27_spill] sm:$0xff] %v4577_v44 }
 0x17d   :  { %4962 = vst [vmem:[#allocation28_spill] sm:$0xff] %v4580_v60  ;;  %4965 = vst [vmem:[#allocation31_spill] sm:$0xff] %v4588_v24  ;;  %v598_v60 = vpop.f32.mrb[12].mxu0 }
 0x17e   :  { %v4590_v54 = vadd.f32 %v598_v60, %v157_v3  ;;  %v600_v50 = vpop.f32.mrb[13].mxu0  ;;  %v642_v60 = vadd.f32 %v4522_v47, %v4520_v46 }
 0x17f   :  { %v942_v52 = vpop.f32.mrb[16].mxu1  ;;  %v4592_v1 = vadd.f32 %v600_v50, %v161_v6  ;;  %v602_v9 = vpop.f32.mrb[14].mxu0  ;;  %v644_v50 = vadd.f32 %v4524_v48, %v4526_v49 }
 0x180   :  { %v990_v44 = vadd.f32 %v942_v52, %v569_v43  ;;  %v944_v14 = vpop.f32.mrb[17].mxu1  ;;  %v4594_v41 = vadd.f32 %v602_v9, %v157_v3  ;;  %v604_v5 = vpop.f32.mrb[15].mxu0 }
 0x181   :  { %v991_v61 = vadd.f32 %v944_v14, %v571_v42  ;;  %v946_v63 = vpop.f32.mrb[18].mxu1  ;;  %v4596_v20 = vadd.f32 %v604_v5, %v161_v6 }
 0x182   :  { %v947_v57 = vpop.f32.mrb[19].mxu1  ;;  %v3483_v24 = vmul.f32 -1.442695, %v990_v44 }
 0x183   :  { %v3484_v45 = vmul.f32 -1.442695, %v991_v61 }
 0x185   :  { %4024 = vpow2.f32 %v3484_v45 }
 0x186   :  { %4026 = vpow2.f32 %v3483_v24 }
 0x18f   :  { %v4025_v43 = vpop.eup %4024 }
 0x190   :  { %v4027_v14 = vpop.eup %4026  ;;  %v1003_v63 = vadd.f32 1.0, %v4025_v43 }
 0x191   :  { %v997_v42 = vadd.f32 1.0, %v4027_v14 }
 0x192   :  { %4028 = vrcp.f32 %v1003_v63 }
 0x193   :  { %4030 = vrcp.f32 %v997_v42 }
 0x19c   :  { %v4029_v9 = vpop.eup %4028 }
 0x19d   :  { %v4031_v5 = vpop.eup %4030  ;;  %v1013_v43 = vmul.f32 0.0, %v4029_v9 }
 0x19f   :  { %v983_v52 = vpop.f32.mrb[20].mxu1 }
 0x1a0   :  { %v992_v3 = vadd.f32 %v983_v52, %v642_v60  ;;  %v985_v57 = vpop.f32.mrb[21].mxu1  ;;  %v4966_v52 = vmov 0  }
 0x1a1   :  { %v993_v6 = vadd.f32 %v985_v57, %v644_v50  ;;  %v987_v61 = vpop.f32.mrb[22].mxu1 }
 0x1a2   :  { %4032 = vtanh.f32 %v992_v3  ;;  %v988_v44 = vpop.f32.mrb[23].mxu1 }
 0x1a3   :  { %v3485_v24 = vmul.f32 -1.442695, %v993_v6 }
 0x1a5   :  { %4034 = vpow2.f32 %v3485_v24 }
 0x1ac   :  { %v4033_v45 = vpop.eup %4032 }
 0x1ad   :  { %v1014_v14 = vmul.f32 %v4033_v45, %v4031_v5 }
 0x1af   :  { %v4035_v46 = vpop.eup %4034  ;;  %v4602_v47 = vadd.f32 %v1014_v14, %v1013_v43 }
 0x1b0   :  { %v1010_v48 = vadd.f32 1.0, %v4035_v46 }
 0x1b1   :  { %4036 = vtanh.f32 %v4602_v47 }
 0x1b2   :  { %4038 = vrcp.f32 %v1010_v48 }
 0x1bb   :  { %v4037_v49 = vpop.eup %4036 }
 0x1bc   :  { %v4039_v63 = vpop.eup %4038 }
 0x1bd   :  { %v1017_v42 = vmul.f32 %v4039_v63, %v4037_v49 }
 0x1bf   :  { %v1018_v60 = vpack.c.bf16 %v1017_v42, %v1017_v42 }
 0x1c1   :  { %v1022_v50 = vrot.slane %v1018_v60, 4  ;;  %1255 = vmatmul.mubr.bf16.vlgmr.msra.gmra.mrb[16].mxu0 %v1018_v60  ;;  %1296 = vmatmul.mubr.bf16.vlgmr.msra.gmra.mrb[24].mxu1 %v1018_v60  ;;  %1020 = vst.msk [vmem:[#allocation3] sm:$0xf] %vm1019_vm0, %v1018_v60 }
 0x1c2   :  { %1537 = vmatpush1.bf16.msra.mxu0 %v4383_v62  ;;  %1578 = vmatpush1.bf16.msra.mxu1 %v4442_v26 }
 0x1c3   :  { %1538 = vmatprep.subr.bf16.mxu0 %v4385_v0  ;;  %1579 = vmatprep.subr.bf16.mxu1 %v4446_v27  ;;  %1025 = vst.msk [vmem:[#allocation3 + $0x18] sm:$0xf0] %vm1024_vm1, %v1022_v50 }
 0x1c4   :  { %1568 = vmatprep.mubr.bf16.mxu0 %v4966_v52  ;;  %1609 = vmatprep.mubr.bf16.mxu1 %v4966_v52 }
 0x1c6   :  { %1539 = vmatpush1.bf16.msra.mxu0 %v4389_v4  ;;  %1580 = vmatpush1.bf16.msra.mxu1 %v4451_v28 }
 0x1c7   :  { %1540 = vmatprep.subr.bf16.mxu0 %v4392_v7  ;;  %1581 = vmatprep.subr.bf16.mxu1 %v4455_v29 }
 0x1ca   :  { %1541 = vmatpush1.bf16.msra.mxu0 %v4394_v8  ;;  %1582 = vmatpush1.bf16.msra.mxu1 %v4461_v30 }
 0x1cb   :  { %1542 = vmatprep.subr.bf16.mxu0 %v4396_v11  ;;  %1583 = vmatprep.subr.bf16.mxu1 %v4465_v31 }
 0x1ce   :  { %1543 = vmatpush1.bf16.msra.mxu0 %v4400_v12  ;;  %1584 = vmatpush1.bf16.msra.mxu1 %v4469_v32 }
 0x1cf   :  { %1544 = vmatprep.subr.bf16.mxu0 %v4402_v13  ;;  %1585 = vmatprep.subr.bf16.mxu1 %v4473_v33 }
 0x1d2   :  { %1545 = vmatpush1.bf16.msra.mxu0 %v4407_v15  ;;  %1586 = vmatpush1.bf16.msra.mxu1 %v4476_v34 }
 0x1d3   :  { %1546 = vmatprep.subr.bf16.mxu0 %v4409_v17  ;;  %1587 = vmatprep.subr.bf16.mxu1 %v4479_v35 }
 0x1d6   :  { %1547 = vmatpush1.bf16.msra.mxu0 %v4415_v18  ;;  %1588 = vmatpush1.bf16.msra.mxu1 %v4482_v36 }
 0x1d7   :  { %1548 = vmatprep.subr.bf16.mxu0 %v4417_v19  ;;  %1589 = vmatprep.subr.bf16.mxu1 %v4485_v37 }
 0x1da   :  { %1549 = vmatpush1.bf16.msra.mxu0 %v4423_v21  ;;  %1590 = vmatpush1.bf16.msra.mxu1 %v4488_v38 }
 0x1db   :  { %1550 = vmatprep.subr.bf16.mxu0 %v4425_v22  ;;  %1591 = vmatprep.subr.bf16.mxu1 %v4491_v39 }
 0x1de   :  { %1551 = vmatpush1.bf16.msra.mxu0 %v4433_v23  ;;  %1592 = vmatpush1.bf16.msra.mxu1 %v4494_v40 }
 0x1df   :  { %1889 = vmatprep.subr.bf16.mxu1 %v4437_v25 }
 0x294   :  { %v1256_v62 = vpop.f32.mrb[16].mxu0  ;;  %v1297_v0 = vpop.f32.mrb[24].mxu1 }
 0x295   :  { %v1304_v4 = vadd.f32 %v1256_v62, %v4546_v10  ;;  %v1306_v7 = vadd.f32 %v1297_v0, %v4529_v51  ;;  %v1258_v8 = vpop.f32.mrb[17].mxu0  ;;  %v1299_v11 = vpop.f32.mrb[25].mxu1 }
 0x296   :  { %v1305_v12 = vadd.f32 %v1258_v8, %v4548_v16  ;;  %v1307_v13 = vadd.f32 %v1299_v11, %v4532_v53  ;;  %v1260_v15 = vpop.f32.mrb[18].mxu0  ;;  %v1301_v17 = vpop.f32.mrb[26].mxu1 }
 0x297   :  { %v3518_v18 = vmul.f32 -1.442695, %v1304_v4  ;;  %v1261_v19 = vpop.f32.mrb[19].mxu0  ;;  %v1302_v21 = vpop.f32.mrb[27].mxu1 }
 0x298   :  { %v3519_v22 = vmul.f32 -1.442695, %v1305_v12  ;;  %v3520_v23 = vmul.f32 -1.442695, %v1307_v13 }
 0x299   :  { %4040 = vpow2.f32 %v3518_v18 }
 0x29a   :  { %4042 = vpow2.f32 %v3519_v22 }
 0x29b   :  { %4044 = vpow2.f32 %v3520_v23 }
 0x29c   :  { %4046 = vtanh.f32 %v1306_v7 }
 0x2a3   :  { %v4041_v25 = vpop.eup %4040 }
 0x2a4   :  { %v4043_v3 = vpop.eup %4042  ;;  %v1311_v10 = vadd.f32 1.0, %v4041_v25 }
 0x2a5   :  { %v1317_v51 = vadd.f32 1.0, %v4043_v3  ;;  %v4045_v16 = vpop.eup %4044 }
 0x2a6   :  { %4048 = vrcp.f32 %v1311_v10  ;;  %v4047_v57 = vpop.eup %4046  ;;  %v1324_v44 = vadd.f32 1.0, %v4045_v16 }
 0x2a7   :  { %4050 = vrcp.f32 %v1317_v51 }
 0x2a8   :  { %4052 = vrcp.f32 %v1324_v44  ;;  %v4750_v44 = vld [vmem:[#allocation9 + $0x2c] ss:$16 sps:$4 sm:$0xff]  }
 0x2b0   :  { %v4049_v53 = vpop.eup %4048 }
 0x2b1   :  { %v4051_v6 = vpop.eup %4050  ;;  %v1328_v61 = vmul.f32 %v4049_v53, %v4047_v57 }
 0x2b2   :  { %v1327_v24 = vmul.f32 %v4051_v6, %v4602_v47  ;;  %v4053_v5 = vpop.eup %4052  ;;  %v4711_v47 = vld [vmem:[#allocation9 + $0xe0] ss:$16 sps:$4 sm:$0xff]   ;;  %v4744_v6 = vld [vmem:[#allocation9 + $0xc] ss:$16 sps:$4 sm:$0xff]  }
 0x2b4   :  { %v4645_v9 = vadd.f32 %v1328_v61, %v1327_v24  ;;  %v4746_v61 = vld [vmem:[#allocation9 + $0x8] ss:$16 sps:$4 sm:$0xff]  }
 0x2b5   :  { %v4752_v24 = vld [vmem:[#allocation9 + $0x28] ss:$16 sps:$4 sm:$0xff]  }
 0x2b6   :  { %4054 = vtanh.f32 %v4645_v9 }
 0x2c0   :  { %v4055_v45 = vpop.eup %4054 }
 0x2c1   :  { %v1331_v43 = vmul.f32 %v4055_v45, %v4053_v5  ;;  %v4758_v5 = vld [vmem:[#allocation9 + $0x48] ss:$16 sps:$4 sm:$0xff]   ;;  %v4762_v45 = vld [vmem:[#allocation9 + $0x6c] ss:$16 sps:$4 sm:$0xff]  }
 0x2c3   :  { %v1332_v14 = vpack.c.bf16 %v1331_v43, %v1331_v43  ;;  %v4764_v43 = vld [vmem:[#allocation9 + $0x68] ss:$16 sps:$4 sm:$0xff]  }
 0x2c5   :  { %v1334_v46 = vrot.slane %v1332_v14, 4  ;;  %1339 = vst.msk [vmem:[#allocation3 + $0x18] sm:$0xf] %vm1338_vm2, %v1332_v14  ;;  %1569 = vmatmul.mubr.bf16.vlgmr.msra.gmra.mrb[20].mxu0 %v1332_v14  ;;  %1610 = vmatmul.mubr.bf16.vlgmr.msra.gmra.mrb[28].mxu1 %v1332_v14  ;;  %v4768_v14 = vld [vmem:[#allocation9 + $0x88] ss:$16 sps:$4 sm:$0xff]  }
 0x2c6   :  { %1890 = vmatpush1.bf16.msra.mxu1 %v4442_v26  ;;  %1880 = vmatprep.mubr.bf16.mxu0 %v4966_v52  ;;  %v4667_v26 = vld [vmem:[#allocation9 + $0x4] ss:$16 sps:$4 sm:$0xff]  }
 0x2c7   :  { %1337 = vst.msk [vmem:[#allocation3] sm:$0xf0] %vm1336_vm3, %v1334_v46  ;;  %1891 = vmatprep.subr.bf16.mxu1 %v4446_v27  ;;  %1921 = vmatprep.mubr.bf16.mxu1 %v4966_v52  ;;  %v4669_v27 = vld [vmem:[#allocation9] ss:$16 sps:$4 sm:$0xff]   ;;  %v4770_v46 = vld [vmem:[#allocation9 + $0x8c] ss:$16 sps:$4 sm:$0xff]  }
 0x2c8   :  { %1848 = vmatprep.subr.bf16.mxu0 %v4667_v26 }
 0x2c9   :  { %1849 = vmatpush1.bf16.msra.mxu0 %v4669_v27 }
 0x2ca   :  { %1892 = vmatpush1.bf16.msra.mxu1 %v4451_v28  ;;  %v4673_v28 = vld [vmem:[#allocation9 + $0x24] ss:$16 sps:$4 sm:$0xff]  }
 0x2cb   :  { %1893 = vmatprep.subr.bf16.mxu1 %v4455_v29  ;;  %v4675_v29 = vld [vmem:[#allocation9 + $0x20] ss:$16 sps:$4 sm:$0xff]   ;;  %1850 = vmatprep.subr.bf16.mxu0 %v4673_v28 }
 0x2cd   :  { %1851 = vmatpush1.bf16.msra.mxu0 %v4675_v29 }
 0x2ce   :  { %1894 = vmatpush1.bf16.msra.mxu1 %v4461_v30  ;;  %v4679_v30 = vld [vmem:[#allocation9 + $0x44] ss:$16 sps:$4 sm:$0xff]  }
 0x2cf   :  { %1895 = vmatprep.subr.bf16.mxu1 %v4465_v31  ;;  %v4681_v31 = vld [vmem:[#allocation9 + $0x40] ss:$16 sps:$4 sm:$0xff]   ;;  %1852 = vmatprep.subr.bf16.mxu0 %v4679_v30 }
 0x2d1   :  { %1853 = vmatpush1.bf16.msra.mxu0 %v4681_v31 }
 0x2d2   :  { %1896 = vmatpush1.bf16.msra.mxu1 %v4469_v32  ;;  %v4685_v32 = vld [vmem:[#allocation9 + $0x64] ss:$16 sps:$4 sm:$0xff]  }
 0x2d3   :  { %1897 = vmatprep.subr.bf16.mxu1 %v4473_v33  ;;  %v4687_v33 = vld [vmem:[#allocation9 + $0x60] ss:$16 sps:$4 sm:$0xff]   ;;  %1854 = vmatprep.subr.bf16.mxu0 %v4685_v32 }
 0x2d5   :  { %1855 = vmatpush1.bf16.msra.mxu0 %v4687_v33 }
 0x2d6   :  { %1898 = vmatpush1.bf16.msra.mxu1 %v4476_v34  ;;  %v4691_v34 = vld [vmem:[#allocation9 + $0x80] ss:$16 sps:$4 sm:$0xff]  }
 0x2d7   :  { %1899 = vmatprep.subr.bf16.mxu1 %v4479_v35  ;;  %v4693_v35 = vld [vmem:[#allocation9 + $0x84] ss:$16 sps:$4 sm:$0xff]  }
 0x2d8   :  { %1856 = vmatprep.subr.bf16.mxu0 %v4693_v35 }
 0x2d9   :  { %1857 = vmatpush1.bf16.msra.mxu0 %v4691_v34 }
 0x2da   :  { %1900 = vmatpush1.bf16.msra.mxu1 %v4482_v36  ;;  %v4695_v36 = vld [vmem:[#allocation9 + $0xa4] ss:$16 sps:$4 sm:$0xff]  }
 0x2db   :  { %1901 = vmatprep.subr.bf16.mxu1 %v4485_v37  ;;  %v4699_v37 = vld [vmem:[#allocation9 + $0xa0] ss:$16 sps:$4 sm:$0xff]   ;;  %1858 = vmatprep.subr.bf16.mxu0 %v4695_v36 }
 0x2dd   :  { %1859 = vmatpush1.bf16.msra.mxu0 %v4699_v37 }
 0x2de   :  { %1902 = vmatpush1.bf16.msra.mxu1 %v4488_v38  ;;  %v4702_v38 = vld [vmem:[#allocation9 + $0xc4] ss:$16 sps:$4 sm:$0xff]  }
 0x2df   :  { %1903 = vmatprep.subr.bf16.mxu1 %v4491_v39  ;;  %v4705_v39 = vld [vmem:[#allocation9 + $0xc0] ss:$16 sps:$4 sm:$0xff]   ;;  %1860 = vmatprep.subr.bf16.mxu0 %v4702_v38 }
 0x2e1   :  { %1861 = vmatpush1.bf16.msra.mxu0 %v4705_v39 }
 0x2e2   :  { %1904 = vmatpush1.bf16.msra.mxu1 %v4494_v40  ;;  %v4708_v40 = vld [vmem:[#allocation9 + $0xe4] ss:$16 sps:$4 sm:$0xff]  }
 0x2e3   :  { %1862 = vmatprep.subr.bf16.mxu0 %v4708_v40  ;;  %2201 = vmatprep.subr.bf16.mxu1 %v4744_v6 }
 0x2e5   :  { %1863 = vmatpush1.bf16.msra.mxu0 %v4711_v47 }
 0x2e6   :  { %2160 = vmatprep.subr.bf16.mxu0 %v4667_v26 }
 0x398   :  { %v1570_v48 = vpop.f32.mrb[20].mxu0  ;;  %v1611_v49 = vpop.f32.mrb[28].mxu1 }
 0x399   :  { %v1618_v63 = vadd.f32 %v1570_v48, %v4562_v55  ;;  %v1620_v42 = vadd.f32 %v1611_v49, %v4535_v56  ;;  %v1572_v60 = vpop.f32.mrb[21].mxu0  ;;  %v1613_v50 = vpop.f32.mrb[29].mxu1  ;;  %v4772_v48 = vld [vmem:[#allocation9 + $0xac] ss:$16 sps:$4 sm:$0xff]   ;;  %v4776_v49 = vld [vmem:[#allocation9 + $0xa8] ss:$16 sps:$4 sm:$0xff]  }
 0x39a   :  { %v1619_v62 = vadd.f32 %v1572_v60, %v4564_v58  ;;  %v1621_v0 = vadd.f32 %v1613_v50, %v4538_v59  ;;  %v1574_v4 = vpop.f32.mrb[22].mxu0  ;;  %v1615_v7 = vpop.f32.mrb[30].mxu1  ;;  %v4785_v60 = vld [vmem:[#allocation9 + $0xec] ss:$16 sps:$4 sm:$0xff]   ;;  %v4788_v50 = vld [vmem:[#allocation9 + $0xe8] ss:$16 sps:$4 sm:$0xff]  }
 0x39b   :  { %v3553_v8 = vmul.f32 -1.442695, %v1618_v63  ;;  %v1575_v11 = vpop.f32.mrb[23].mxu0  ;;  %v1616_v12 = vpop.f32.mrb[31].mxu1  ;;  %v4779_v63 = vld [vmem:[#allocation9 + $0xcc] ss:$16 sps:$4 sm:$0xff]  }
 0x39c   :  { %v3554_v13 = vmul.f32 -1.442695, %v1619_v62  ;;  %v3555_v15 = vmul.f32 -1.442695, %v1621_v0  ;;  %v4967_v4 = vld [vmem:[#allocation23_spill] sm:$0xff] }
 0x39d   :  { %4056 = vpow2.f32 %v3553_v8  ;;  %v4968_v8 = vld [vmem:[#allocation17_spill] sm:$0xff] }
 0x39e   :  { %4058 = vpow2.f32 %v3554_v13 }
 0x39f   :  { %4060 = vpow2.f32 %v3555_v15  ;;  %v4969_v15 = vld [vmem:[#allocation24_spill] sm:$0xff] }
 0x3a0   :  { %4062 = vtanh.f32 %v1620_v42  ;;  %v4782_v42 = vld [vmem:[#allocation9 + $0xc8] ss:$16 sps:$4 sm:$0xff]  }
 0x3a7   :  { %v4057_v17 = vpop.eup %4056 }
 0x3a8   :  { %v4059_v18 = vpop.eup %4058  ;;  %v1625_v55 = vadd.f32 1.0, %v4057_v17 }
 0x3a9   :  { %v1631_v56 = vadd.f32 1.0, %v4059_v18  ;;  %v4061_v58 = vpop.eup %4060  ;;  %v4970_v18 = vld [vmem:[#allocation18_spill] sm:$0xff] }
 0x3aa   :  { %4064 = vrcp.f32 %v1625_v55  ;;  %v4063_v19 = vpop.eup %4062  ;;  %v1638_v23 = vadd.f32 1.0, %v4061_v58 }
 0x3ab   :  { %4066 = vrcp.f32 %v1631_v56 }
 0x3ac   :  { %4068 = vrcp.f32 %v1638_v23 }
 0x3b4   :  { %v4065_v59 = vpop.eup %4064 }
 0x3b5   :  { %v4067_v21 = vpop.eup %4066  ;;  %v1642_v22 = vmul.f32 %v4065_v59, %v4063_v19 }
 0x3b6   :  { %v1641_v25 = vmul.f32 %v4067_v21, %v4645_v9  ;;  %v4069_v10 = vpop.eup %4068  ;;  %v4756_v9 = vld [vmem:[#allocation9 + $0x4c] ss:$16 sps:$4 sm:$0xff]  }
 0x3b8   :  { %v4721_v3 = vadd.f32 %v1642_v22, %v1641_v25 }
 0x3ba   :  { %4070 = vtanh.f32 %v4721_v3 }
 0x3c4   :  { %v4071_v51 = vpop.eup %4070 }
 0x3c5   :  { %v1645_v16 = vmul.f32 %v4071_v51, %v4069_v10 }
 0x3c7   :  { %v1646_v57 = vpack.c.bf16 %v1645_v16, %v1645_v16 }
 0x3c9   :  { %1647 = vst.msk [vmem:[#allocation3 + $0x8] sm:$0xf] %vm1019_vm0, %v1646_v57  ;;  %v1649_v53 = vrot.slane %v1646_v57, 4  ;;  %1881 = vmatmul.mubr.bf16.vlgmr.msra.gmra.mrb[24].mxu0 %v1646_v57  ;;  %1922 = vmatmul.mubr.bf16.vlgmr.msra.gmra.mrb[32].mxu1 %v1646_v57 }
 0x3ca   :  { %2161 = vmatpush1.bf16.msra.mxu0 %v4669_v27  ;;  %2192 = vmatprep.mubr.bf16.mxu0 %v4966_v52 }
 0x3cb   :  { %1651 = vst.msk [vmem:[#allocation3 + $0x10] sm:$0xf0] %vm1024_vm1, %v1649_v53  ;;  %2162 = vmatprep.subr.bf16.mxu0 %v4673_v28  ;;  %2233 = vmatprep.mubr.bf16.mxu1 %v4966_v52 }
 0x3cc   :  { %2202 = vmatpush1.bf16.msra.mxu1 %v4746_v61 }
 0x3cd   :  { %2203 = vmatprep.subr.bf16.mxu1 %v4750_v44 }
 0x3ce   :  { %2163 = vmatpush1.bf16.msra.mxu0 %v4675_v29 }
 0x3cf   :  { %2164 = vmatprep.subr.bf16.mxu0 %v4679_v30 }
 0x3d0   :  { %2204 = vmatpush1.bf16.msra.mxu1 %v4752_v24 }
 0x3d1   :  { %2205 = vmatprep.subr.bf16.mxu1 %v4756_v9 }
 0x3d2   :  { %2165 = vmatpush1.bf16.msra.mxu0 %v4681_v31 }
 0x3d3   :  { %2166 = vmatprep.subr.bf16.mxu0 %v4685_v32 }
 0x3d4   :  { %2206 = vmatpush1.bf16.msra.mxu1 %v4758_v5 }
 0x3d5   :  { %2207 = vmatprep.subr.bf16.mxu1 %v4762_v45 }
 0x3d6   :  { %2167 = vmatpush1.bf16.msra.mxu0 %v4687_v33 }
 0x3d7   :  { %2168 = vmatprep.subr.bf16.mxu0 %v4693_v35 }
 0x3d8   :  { %2208 = vmatpush1.bf16.msra.mxu1 %v4764_v43 }
 0x3d9   :  { %2209 = vmatprep.subr.bf16.mxu1 %v4770_v46 }
 0x3da   :  { %2169 = vmatpush1.bf16.msra.mxu0 %v4691_v34 }
 0x3db   :  { %2170 = vmatprep.subr.bf16.mxu0 %v4695_v36 }
 0x3dc   :  { %2210 = vmatpush1.bf16.msra.mxu1 %v4768_v14 }
 0x3dd   :  { %2211 = vmatprep.subr.bf16.mxu1 %v4772_v48 }
 0x3de   :  { %2171 = vmatpush1.bf16.msra.mxu0 %v4699_v37 }
 0x3df   :  { %2172 = vmatprep.subr.bf16.mxu0 %v4702_v38 }
 0x3e0   :  { %2212 = vmatpush1.bf16.msra.mxu1 %v4776_v49 }
 0x3e1   :  { %2213 = vmatprep.subr.bf16.mxu1 %v4779_v63 }
 0x3e2   :  { %2173 = vmatpush1.bf16.msra.mxu0 %v4705_v39 }
 0x3e3   :  { %2174 = vmatprep.subr.bf16.mxu0 %v4708_v40 }
 0x3e4   :  { %2214 = vmatpush1.bf16.msra.mxu1 %v4782_v42 }
 0x3e5   :  { %2215 = vmatprep.subr.bf16.mxu1 %v4785_v60 }
 0x3e6   :  { %2175 = vmatpush1.bf16.msra.mxu0 %v4711_v47 }
 0x3e7   :  { %2472 = vmatprep.subr.bf16.mxu0 %v4667_v26 }
 0x3e8   :  { %2216 = vmatpush1.bf16.msra.mxu1 %v4788_v50 }
 0x3e9   :  { %2513 = vmatprep.subr.bf16.mxu1 %v4744_v6 }
 0x49c   :  { %v1882_v62 = vpop.f32.mrb[24].mxu0  ;;  %v1923_v0 = vpop.f32.mrb[32].mxu1 }
 0x49d   :  { %v1930_v7 = vadd.f32 %v1882_v62, %v4967_v4  ;;  %v1932_v11 = vadd.f32 %v1923_v0, %v4968_v8  ;;  %v1884_v12 = vpop.f32.mrb[25].mxu0  ;;  %v1925_v13 = vpop.f32.mrb[33].mxu1 }
 0x49e   :  { %v1931_v17 = vadd.f32 %v1884_v12, %v4969_v15  ;;  %v1933_v55 = vadd.f32 %v1925_v13, %v4970_v18  ;;  %v1886_v56 = vpop.f32.mrb[26].mxu0  ;;  %v1927_v58 = vpop.f32.mrb[34].mxu1 }
 0x49f   :  { %v3588_v19 = vmul.f32 -1.442695, %v1930_v7  ;;  %v1887_v59 = vpop.f32.mrb[27].mxu0  ;;  %v1928_v21 = vpop.f32.mrb[35].mxu1  ;;  %v4971_v56 = vld [vmem:[#allocation29_spill] sm:$0xff] }
 0x4a0   :  { %v3589_v22 = vmul.f32 -1.442695, %v1931_v17  ;;  %v3590_v23 = vmul.f32 -1.442695, %v1933_v55 }
 0x4a1   :  { %4072 = vpow2.f32 %v3588_v19  ;;  %v4972_v19 = vld [vmem:[#allocation19_spill] sm:$0xff] }
 0x4a2   :  { %4074 = vpow2.f32 %v3589_v22 }
 0x4a3   :  { %4076 = vpow2.f32 %v3590_v23  ;;  %v4973_v23 = vld [vmem:[#allocation30_spill] sm:$0xff] }
 0x4a4   :  { %4078 = vtanh.f32 %v1932_v11 }
 0x4ab   :  { %v4073_v25 = vpop.eup %4072 }
 0x4ac   :  { %v4075_v10 = vpop.eup %4074  ;;  %v1937_v51 = vadd.f32 1.0, %v4073_v25 }
 0x4ad   :  { %v1943_v16 = vadd.f32 1.0, %v4075_v10  ;;  %v4077_v57 = vpop.eup %4076  ;;  %v4974_v10 = vld [vmem:[#allocation20_spill] sm:$0xff] }
 0x4ae   :  { %4080 = vrcp.f32 %v1937_v51  ;;  %v4079_v53 = vpop.eup %4078  ;;  %v1950_v7 = vadd.f32 1.0, %v4077_v57 }
 0x4af   :  { %4082 = vrcp.f32 %v1943_v16 }
 0x4b0   :  { %4084 = vrcp.f32 %v1950_v7 }
 0x4b8   :  { %v4081_v62 = vpop.eup %4080 }
 0x4b9   :  { %v4083_v0 = vpop.eup %4082  ;;  %v1954_v4 = vmul.f32 %v4081_v62, %v4079_v53 }
 0x4ba   :  { %v1953_v8 = vmul.f32 %v4083_v0, %v4721_v3  ;;  %v4085_v13 = vpop.eup %4084 }
 0x4bc   :  { %v4798_v12 = vadd.f32 %v1954_v4, %v1953_v8 }
 0x4be   :  { %4086 = vtanh.f32 %v4798_v12 }
 0x4c8   :  { %v4087_v15 = vpop.eup %4086 }
 0x4c9   :  { %v1957_v17 = vmul.f32 %v4087_v15, %v4085_v13 }
 0x4cb   :  { %v1958_v11 = vpack.c.bf16 %v1957_v17, %v1957_v17 }
 0x4cd   :  { %v1960_v18 = vrot.slane %v1958_v11, 4  ;;  %1963 = vst.msk [vmem:[#allocation3 + $0x10] sm:$0xf] %vm1338_vm2, %v1958_v11  ;;  %2193 = vmatmul.mubr.bf16.vlgmr.msra.gmra.mrb[28].mxu0 %v1958_v11  ;;  %2234 = vmatmul.mubr.bf16.vlgmr.msra.gmra.mrb[36].mxu1 %v1958_v11 }
 0x4ce   :  { %2473 = vmatpush1.bf16.msra.mxu0 %v4669_v27  ;;  %2514 = vmatpush1.bf16.msra.mxu1 %v4746_v61 }
 0x4cf   :  { %1962 = vst.msk [vmem:[#allocation3 + $0x8] sm:$0xf0] %vm1336_vm3, %v1960_v18  ;;  %2474 = vmatprep.subr.bf16.mxu0 %v4673_v28  ;;  %2515 = vmatprep.subr.bf16.mxu1 %v4750_v44 }
 0x4d0   :  { %2504 = vmatprep.mubr.bf16.mxu0 %v4966_v52  ;;  %2545 = vmatprep.mubr.bf16.mxu1 %v4966_v52 }
 0x4d2   :  { %2475 = vmatpush1.bf16.msra.mxu0 %v4675_v29  ;;  %2516 = vmatpush1.bf16.msra.mxu1 %v4752_v24 }
 0x4d3   :  { %2476 = vmatprep.subr.bf16.mxu0 %v4679_v30  ;;  %2517 = vmatprep.subr.bf16.mxu1 %v4756_v9 }
 0x4d6   :  { %2477 = vmatpush1.bf16.msra.mxu0 %v4681_v31  ;;  %2518 = vmatpush1.bf16.msra.mxu1 %v4758_v5 }
 0x4d7   :  { %2478 = vmatprep.subr.bf16.mxu0 %v4685_v32  ;;  %2519 = vmatprep.subr.bf16.mxu1 %v4762_v45 }
 0x4da   :  { %2479 = vmatpush1.bf16.msra.mxu0 %v4687_v33  ;;  %2520 = vmatpush1.bf16.msra.mxu1 %v4764_v43 }
 0x4db   :  { %2480 = vmatprep.subr.bf16.mxu0 %v4693_v35  ;;  %2521 = vmatprep.subr.bf16.mxu1 %v4770_v46 }
 0x4de   :  { %2481 = vmatpush1.bf16.msra.mxu0 %v4691_v34  ;;  %2522 = vmatpush1.bf16.msra.mxu1 %v4768_v14 }
 0x4df   :  { %2482 = vmatprep.subr.bf16.mxu0 %v4695_v36  ;;  %2523 = vmatprep.subr.bf16.mxu1 %v4772_v48 }
 0x4e2   :  { %2483 = vmatpush1.bf16.msra.mxu0 %v4699_v37  ;;  %2524 = vmatpush1.bf16.msra.mxu1 %v4776_v49 }
 0x4e3   :  { %2484 = vmatprep.subr.bf16.mxu0 %v4702_v38  ;;  %2525 = vmatprep.subr.bf16.mxu1 %v4779_v63 }
 0x4e6   :  { %2485 = vmatpush1.bf16.msra.mxu0 %v4705_v39  ;;  %2526 = vmatpush1.bf16.msra.mxu1 %v4782_v42 }
 0x4e7   :  { %2486 = vmatprep.subr.bf16.mxu0 %v4708_v40  ;;  %2527 = vmatprep.subr.bf16.mxu1 %v4785_v60 }
 0x4ea   :  { %2487 = vmatpush1.bf16.msra.mxu0 %v4711_v47  ;;  %2528 = vmatpush1.bf16.msra.mxu1 %v4788_v50 }
 0x4eb   :  { %2784 = vmatprep.subr.bf16.mxu0 %v4667_v26  ;;  %2825 = vmatprep.subr.bf16.mxu1 %v4744_v6 }
 0x5a0   :  { %v2194_v3 = vpop.f32.mrb[28].mxu0  ;;  %v2235_v55 = vpop.f32.mrb[36].mxu1 }
 0x5a1   :  { %v2242_v58 = vadd.f32 %v2194_v3, %v4971_v56  ;;  %v2244_v59 = vadd.f32 %v2235_v55, %v4972_v19  ;;  %v2196_v21 = vpop.f32.mrb[29].mxu0  ;;  %v2237_v22 = vpop.f32.mrb[37].mxu1 }
 0x5a2   :  { %v2243_v25 = vadd.f32 %v2196_v21, %v4973_v23  ;;  %v2245_v51 = vadd.f32 %v2237_v22, %v4974_v10  ;;  %v2198_v16 = vpop.f32.mrb[30].mxu0  ;;  %v2239_v57 = vpop.f32.mrb[38].mxu1 }
 0x5a3   :  { %v3623_v53 = vmul.f32 -1.442695, %v2242_v58  ;;  %v2199_v62 = vpop.f32.mrb[31].mxu0  ;;  %v2240_v0 = vpop.f32.mrb[39].mxu1 }
 0x5a4   :  { %v3624_v26 = vmul.f32 -1.442695, %v2243_v25  ;;  %v3625_v4 = vmul.f32 -1.442695, %v2245_v51 }
 0x5a5   :  { %4088 = vpow2.f32 %v3623_v53 }
 0x5a6   :  { %4090 = vpow2.f32 %v3624_v26 }
 0x5a7   :  { %4092 = vpow2.f32 %v3625_v4 }
 0x5a8   :  { %4094 = vtanh.f32 %v2244_v59 }
 0x5af   :  { %v4089_v7 = vpop.eup %4088 }
 0x5b0   :  { %v4091_v8 = vpop.eup %4090  ;;  %v2249_v13 = vadd.f32 1.0, %v4089_v7 }
 0x5b1   :  { %v2255_v15 = vadd.f32 1.0, %v4091_v8  ;;  %v4093_v17 = vpop.eup %4092 }
 0x5b2   :  { %4096 = vrcp.f32 %v2249_v13  ;;  %v4095_v11 = vpop.eup %4094  ;;  %v2262_v56 = vadd.f32 1.0, %v4093_v17 }
 0x5b3   :  { %4098 = vrcp.f32 %v2255_v15 }
 0x5b4   :  { %4100 = vrcp.f32 %v2262_v56 }
 0x5bc   :  { %v4097_v18 = vpop.eup %4096 }
 0x5bd   :  { %v4099_v3 = vpop.eup %4098  ;;  %v2266_v55 = vmul.f32 %v4097_v18, %v4095_v11 }
 0x5be   :  { %v2265_v58 = vmul.f32 %v4099_v3, %v4798_v12  ;;  %v4101_v21 = vpop.eup %4100 }
 0x5c0   :  { %v4842_v19 = vadd.f32 %v2266_v55, %v2265_v58 }
 0x5c2   :  { %4102 = vtanh.f32 %v4842_v19 }
 0x5cc   :  { %v4103_v22 = vpop.eup %4102 }
 0x5cd   :  { %v2269_v23 = vmul.f32 %v4103_v22, %v4101_v21 }
 0x5cf   :  { %v2270_v59 = vpack.c.bf16 %v2269_v23, %v2269_v23 }
 0x5d1   :  { %2271 = vst.msk [vmem:[#allocation3 + $0x10] sm:$0xf] %vm1019_vm0, %v2270_v59  ;;  %v2273_v25 = vrot.slane %v2270_v59, 4  ;;  %2505 = vmatmul.mubr.bf16.vlgmr.msra.gmra.mrb[32].mxu0 %v2270_v59  ;;  %2546 = vmatmul.mubr.bf16.vlgmr.msra.gmra.mrb[40].mxu1 %v2270_v59 }
 0x5d2   :  { %2785 = vmatpush1.bf16.msra.mxu0 %v4669_v27  ;;  %2826 = vmatpush1.bf16.msra.mxu1 %v4746_v61 }
 0x5d3   :  { %2275 = vst.msk [vmem:[#allocation3 + $0x8] sm:$0xf0] %vm1024_vm1, %v2273_v25  ;;  %2786 = vmatprep.subr.bf16.mxu0 %v4673_v28  ;;  %2827 = vmatprep.subr.bf16.mxu1 %v4750_v44  ;;  %v4979_v25 = vld [vmem:[#allocation26_spill] sm:$0xff] }
 0x5d4   :  { %2816 = vmatprep.mubr.bf16.mxu0 %v4966_v52  ;;  %2857 = vmatprep.mubr.bf16.mxu1 %v4966_v52 }
 0x5d6   :  { %2787 = vmatpush1.bf16.msra.mxu0 %v4675_v29  ;;  %2828 = vmatpush1.bf16.msra.mxu1 %v4752_v24 }
 0x5d7   :  { %2788 = vmatprep.subr.bf16.mxu0 %v4679_v30  ;;  %2829 = vmatprep.subr.bf16.mxu1 %v4756_v9  ;;  %v4975_v30 = vld [vmem:[#allocation21_spill] sm:$0xff] }
 0x5da   :  { %2789 = vmatpush1.bf16.msra.mxu0 %v4681_v31  ;;  %2830 = vmatpush1.bf16.msra.mxu1 %v4758_v5 }
 0x5db   :  { %2790 = vmatprep.subr.bf16.mxu0 %v4685_v32  ;;  %2831 = vmatprep.subr.bf16.mxu1 %v4762_v45 }
 0x5de   :  { %2791 = vmatpush1.bf16.msra.mxu0 %v4687_v33  ;;  %2832 = vmatpush1.bf16.msra.mxu1 %v4764_v43 }
 0x5df   :  { %2792 = vmatprep.subr.bf16.mxu0 %v4693_v35  ;;  %2833 = vmatprep.subr.bf16.mxu1 %v4770_v46 }
 0x5e2   :  { %2793 = vmatpush1.bf16.msra.mxu0 %v4691_v34  ;;  %2834 = vmatpush1.bf16.msra.mxu1 %v4768_v14  ;;  %v4976_v34 = vld [vmem:[#allocation31_spill] sm:$0xff] }
 0x5e3   :  { %2794 = vmatprep.subr.bf16.mxu0 %v4695_v36  ;;  %2835 = vmatprep.subr.bf16.mxu1 %v4772_v48  ;;  %v4977_v36 = vld [vmem:[#allocation22_spill] sm:$0xff] }
 0x5e6   :  { %2795 = vmatpush1.bf16.msra.mxu0 %v4699_v37  ;;  %2836 = vmatpush1.bf16.msra.mxu1 %v4776_v49 }
 0x5e7   :  { %2796 = vmatprep.subr.bf16.mxu0 %v4702_v38  ;;  %2837 = vmatprep.subr.bf16.mxu1 %v4779_v63 }
 0x5ea   :  { %2797 = vmatpush1.bf16.msra.mxu0 %v4705_v39  ;;  %2838 = vmatpush1.bf16.msra.mxu1 %v4782_v42 }
 0x5eb   :  { %2798 = vmatprep.subr.bf16.mxu0 %v4708_v40  ;;  %2839 = vmatprep.subr.bf16.mxu1 %v4785_v60 }
 0x5ee   :  { %2799 = vmatpush1.bf16.msra.mxu0 %v4711_v47  ;;  %2840 = vmatpush1.bf16.msra.mxu1 %v4788_v50 }
 0x5ef   :  { %3137 = vmatprep.subr.bf16.mxu1 %v4744_v6 }
 0x6a4   :  { %v2506_v27 = vpop.f32.mrb[32].mxu0  ;;  %v2547_v28 = vpop.f32.mrb[40].mxu1 }
 0x6a5   :  { %v2554_v29 = vadd.f32 %v2506_v27, %v4586_v2  ;;  %v2556_v31 = vadd.f32 %v2547_v28, %v4975_v30  ;;  %v2508_v32 = vpop.f32.mrb[33].mxu0  ;;  %v2549_v33 = vpop.f32.mrb[41].mxu1 }
 0x6a6   :  { %v2555_v35 = vadd.f32 %v2508_v32, %v4976_v34  ;;  %v2557_v37 = vadd.f32 %v2549_v33, %v4977_v36  ;;  %v2510_v38 = vpop.f32.mrb[34].mxu0  ;;  %v2551_v39 = vpop.f32.mrb[42].mxu1 }
 0x6a7   :  { %v3658_v40 = vmul.f32 -1.442695, %v2554_v29  ;;  %v2511_v47 = vpop.f32.mrb[35].mxu0  ;;  %v2552_v12 = vpop.f32.mrb[43].mxu1 }
 0x6a8   :  { %v3659_v10 = vmul.f32 -1.442695, %v2555_v35  ;;  %v3660_v6 = vmul.f32 -1.442695, %v2557_v37 }
 0x6a9   :  { %4104 = vpow2.f32 %v3658_v40 }
 0x6aa   :  { %4106 = vpow2.f32 %v3659_v10 }
 0x6ab   :  { %4108 = vpow2.f32 %v3660_v6 }
 0x6ac   :  { %4110 = vtanh.f32 %v2556_v31 }
 0x6b3   :  { %v4105_v51 = vpop.eup %4104 }
 0x6b4   :  { %v4107_v16 = vpop.eup %4106  ;;  %v2561_v2 = vadd.f32 1.0, %v4105_v51 }
 0x6b5   :  { %v2567_v57 = vadd.f32 1.0, %v4107_v16  ;;  %v4109_v53 = vpop.eup %4108 }
 0x6b6   :  { %4112 = vrcp.f32 %v2561_v2  ;;  %v4111_v62 = vpop.eup %4110  ;;  %v2574_v7 = vadd.f32 1.0, %v4109_v53 }
 0x6b7   :  { %4114 = vrcp.f32 %v2567_v57 }
 0x6b8   :  { %4116 = vrcp.f32 %v2574_v7  ;;  %v4020_v7 = vld [vmem:[#allocation10 + $0x20] sm:$0xff]  }
 0x6c0   :  { %v4113_v0 = vpop.eup %4112 }
 0x6c1   :  { %v4115_v26 = vpop.eup %4114  ;;  %v2578_v4 = vmul.f32 %v4113_v0, %v4111_v62  ;;  %v4016_v62 = vld [vmem:[#allocation10] sm:$0xff]   ;;  %v4017_v0 = vld [vmem:[#allocation10 + $0x8] sm:$0xff]  }
 0x6c2   :  { %v2577_v8 = vmul.f32 %v4115_v26, %v4842_v19  ;;  %v4117_v15 = vpop.eup %4116  ;;  %v4978_v19 = vld [vmem:[#allocation25_spill] sm:$0xff]  ;;  %v4018_v26 = vld [vmem:[#allocation10 + $0x10] sm:$0xff]  }
 0x6c4   :  { %v4885_v13 = vadd.f32 %v2578_v4, %v2577_v8  ;;  %v4019_v4 = vld [vmem:[#allocation10 + $0x18] sm:$0xff]   ;;  %v4021_v8 = vld [vmem:[#allocation10 + $0x28] sm:$0xff]  }
 0x6c6   :  { %4118 = vtanh.f32 %v4885_v13 }
 0x6d0   :  { %v4119_v17 = vpop.eup %4118 }
 0x6d1   :  { %v2581_v11 = vmul.f32 %v4119_v17, %v4117_v15  ;;  %v4023_v15 = vld [vmem:[#allocation10 + $0x38] sm:$0xff]  }
 0x6d3   :  { %v2582_v18 = vpack.c.bf16 %v2581_v11, %v2581_v11 }
 0x6d5   :  { %v2584_v3 = vrot.slane %v2582_v18, 4  ;;  %2587 = vst.msk [vmem:[#allocation3 + $0x8] sm:$0xf] %vm1338_vm2, %v2582_v18  ;;  %2817 = vmatmul.mubr.bf16.vlgmr.msra.gmra.mrb[36].mxu0 %v2582_v18  ;;  %2858 = vmatmul.mubr.bf16.vlgmr.msra.gmra.mrb[44].mxu1 %v2582_v18 }
 0x6d6   :  { %3138 = vmatpush1.bf16.msra.mxu1 %v4746_v61  ;;  %3128 = vmatprep.mubr.bf16.mxu0 %v4966_v52  ;;  %v3992_v61 = vld [vmem:[#allocation9] ss:$16 sps:$4 sm:$0xff]  }
 0x6d7   :  { %2586 = vst.msk [vmem:[#allocation3 + $0x10] sm:$0xf0] %vm1336_vm3, %v2584_v3  ;;  %3139 = vmatprep.subr.bf16.mxu1 %v4750_v44  ;;  %3169 = vmatprep.mubr.bf16.mxu1 %v4966_v52  ;;  %v3994_v52 = vld [vmem:[#allocation9 + $0x4] ss:$16 sps:$4 sm:$0xff]  }
 0x6d8   :  { %3096 = vmatprep.subr.bf16.mxu0 %v3994_v52  ;;  %v3997_v44 = vld [vmem:[#allocation9 + $0x24] ss:$16 sps:$4 sm:$0xff]  }
 0x6d9   :  { %3097 = vmatpush1.bf16.msra.mxu0 %v3992_v61  ;;  %v4980_v3 = vld [vmem:[#allocation27_spill] sm:$0xff] }
 0x6da   :  { %3140 = vmatpush1.bf16.msra.mxu1 %v4752_v24  ;;  %v3995_v24 = vld [vmem:[#allocation9 + $0x20] ss:$16 sps:$4 sm:$0xff]   ;;  %3098 = vmatprep.subr.bf16.mxu0 %v3997_v44 }
 0x6db   :  { %3141 = vmatprep.subr.bf16.mxu1 %v4756_v9  ;;  %v4000_v9 = vld [vmem:[#allocation9 + $0x44] ss:$16 sps:$4 sm:$0xff]  }
 0x6dd   :  { %3099 = vmatpush1.bf16.msra.mxu0 %v3995_v24 }
 0x6de   :  { %3142 = vmatpush1.bf16.msra.mxu1 %v4758_v5  ;;  %v3998_v5 = vld [vmem:[#allocation9 + $0x40] ss:$16 sps:$4 sm:$0xff]   ;;  %3100 = vmatprep.subr.bf16.mxu0 %v4000_v9  ;;  %v4981_v9 = vld [vmem:[#allocation28_spill] sm:$0xff] }
 0x6df   :  { %3143 = vmatprep.subr.bf16.mxu1 %v4762_v45  ;;  %v4003_v45 = vld [vmem:[#allocation9 + $0x64] ss:$16 sps:$4 sm:$0xff]  }
 0x6e1   :  { %3101 = vmatpush1.bf16.msra.mxu0 %v3998_v5 }
 0x6e2   :  { %3144 = vmatpush1.bf16.msra.mxu1 %v4764_v43  ;;  %v4001_v43 = vld [vmem:[#allocation9 + $0x60] ss:$16 sps:$4 sm:$0xff]   ;;  %3102 = vmatprep.subr.bf16.mxu0 %v4003_v45 }
 0x6e3   :  { %3145 = vmatprep.subr.bf16.mxu1 %v4770_v46  ;;  %v4006_v46 = vld [vmem:[#allocation9 + $0x84] ss:$16 sps:$4 sm:$0xff]  }
 0x6e5   :  { %3103 = vmatpush1.bf16.msra.mxu0 %v4001_v43 }
 0x6e6   :  { %3146 = vmatpush1.bf16.msra.mxu1 %v4768_v14  ;;  %v4004_v14 = vld [vmem:[#allocation9 + $0x80] ss:$16 sps:$4 sm:$0xff]   ;;  %3104 = vmatprep.subr.bf16.mxu0 %v4006_v46 }
 0x6e7   :  { %3147 = vmatprep.subr.bf16.mxu1 %v4772_v48  ;;  %v4009_v48 = vld [vmem:[#allocation9 + $0xa4] ss:$16 sps:$4 sm:$0xff]  }
 0x6e9   :  { %3105 = vmatpush1.bf16.msra.mxu0 %v4004_v14 }
 0x6ea   :  { %3148 = vmatpush1.bf16.msra.mxu1 %v4776_v49  ;;  %v4007_v49 = vld [vmem:[#allocation9 + $0xa0] ss:$16 sps:$4 sm:$0xff]   ;;  %3106 = vmatprep.subr.bf16.mxu0 %v4009_v48 }
 0x6eb   :  { %3149 = vmatprep.subr.bf16.mxu1 %v4779_v63  ;;  %v4012_v63 = vld [vmem:[#allocation9 + $0xc4] ss:$16 sps:$4 sm:$0xff]  }
 0x6ed   :  { %3107 = vmatpush1.bf16.msra.mxu0 %v4007_v49 }
 0x6ee   :  { %3150 = vmatpush1.bf16.msra.mxu1 %v4782_v42  ;;  %v4010_v42 = vld [vmem:[#allocation9 + $0xc0] ss:$16 sps:$4 sm:$0xff]   ;;  %3108 = vmatprep.subr.bf16.mxu0 %v4012_v63 }
 0x6ef   :  { %3151 = vmatprep.subr.bf16.mxu1 %v4785_v60  ;;  %v4015_v60 = vld [vmem:[#allocation9 + $0xe4] ss:$16 sps:$4 sm:$0xff]  }
 0x6f1   :  { %3109 = vmatpush1.bf16.msra.mxu0 %v4010_v42 }
 0x6f2   :  { %3152 = vmatpush1.bf16.msra.mxu1 %v4788_v50  ;;  %v4013_v50 = vld [vmem:[#allocation9 + $0xe0] ss:$16 sps:$4 sm:$0xff]   ;;  %3110 = vmatprep.subr.bf16.mxu0 %v4015_v60 }
 0x6f5   :  { %3111 = vmatpush1.bf16.msra.mxu0 %v4013_v50 }
 0x6f6   :  { %3752 = vmatprep.subr.bf16.mxu0 %v4016_v62 }
 0x7a8   :  { %v2818_v55 = vpop.f32.mrb[36].mxu0  ;;  %v2859_v56 = vpop.f32.mrb[44].mxu1 }
 0x7a9   :  { %v2866_v58 = vadd.f32 %v2818_v55, %v4590_v54  ;;  %v2868_v21 = vadd.f32 %v2859_v56, %v4978_v19  ;;  %v2820_v22 = vpop.f32.mrb[37].mxu0  ;;  %v2861_v23 = vpop.f32.mrb[45].mxu1 }
 0x7aa   :  { %v2867_v59 = vadd.f32 %v2820_v22, %v4592_v1  ;;  %v2869_v27 = vadd.f32 %v2861_v23, %v4979_v25  ;;  %v2822_v28 = vpop.f32.mrb[38].mxu0  ;;  %v2863_v29 = vpop.f32.mrb[46].mxu1 }
 0x7ab   :  { %v3693_v30 = vmul.f32 -1.442695, %v2866_v58  ;;  %v2823_v31 = vpop.f32.mrb[39].mxu0  ;;  %v2864_v32 = vpop.f32.mrb[47].mxu1 }
 0x7ac   :  { %v3694_v33 = vmul.f32 -1.442695, %v2867_v59  ;;  %v3695_v34 = vmul.f32 -1.442695, %v2869_v27  ;;  %v3213_v31 = vld [vmem:[#allocation3 + $0x8] sm:$0xff]  ;;  %v3214_v32 = vld [vmem:[#allocation3 + $0x10] sm:$0xff] }
 0x7ad   :  { %4120 = vpow2.f32 %v3693_v30 }
 0x7ae   :  { %4122 = vpow2.f32 %v3694_v33 }
 0x7af   :  { %4124 = vpow2.f32 %v3695_v34  ;;  %v3731_v34 = vld [vmem:[%s4947_s5] ss:$0 sm:$0xff]  ;;  %s4240_s5 = scalar_lea.vmem %s3366_s28, 1024 }
 0x7b0   :  { %4126 = vtanh.f32 %v2868_v21  ;;  %p4241_p4 = scmp.ne.s32.totalorder %s3366_s28, %s4240_s5  ;;  %p4246_p6 = scmp.lt.s32.totalorder %s4240_s5, %s4240_s5 }
 0x7b2   :  { %p4247_p7 = por %p4246_p6, %p4245_p5 }
 0x7b4   :  { %p4248_p8 = pnand %p4247_p7, %p4241_p4 }
 0x7b7   :  { %v4121_v35 = vpop.eup %4120 }
 0x7b8   :  { %v4123_v36 = vpop.eup %4122  ;;  %v2873_v54 = vadd.f32 1.0, %v4121_v35 }
 0x7b9   :  { %v2879_v37 = vadd.f32 1.0, %v4123_v36  ;;  %v4125_v1 = vpop.eup %4124 }
 0x7ba   :  { %4128 = vrcp.f32 %v2873_v54  ;;  %v4127_v38 = vpop.eup %4126  ;;  %v2886_v12 = vadd.f32 1.0, %v4125_v1 }
 0x7bb   :  { %4130 = vrcp.f32 %v2879_v37 }
 0x7bc   :  { %4132 = vrcp.f32 %v2886_v12 }
 0x7c4   :  { %v4129_v39 = vpop.eup %4128 }
 0x7c5   :  { %v4131_v40 = vpop.eup %4130  ;;  %v2890_v47 = vmul.f32 %v4129_v39, %v4127_v38 }
 0x7c6   :  { %v2889_v10 = vmul.f32 %v4131_v40, %v4885_v13  ;;  %v4133_v51 = vpop.eup %4132  ;;  %v4022_v13 = vld [vmem:[#allocation10 + $0x30] sm:$0xff]  }
 0x7c8   :  { %v4912_v6 = vadd.f32 %v2890_v47, %v2889_v10 }
 0x7ca   :  { %4134 = vtanh.f32 %v4912_v6 }
 0x7d4   :  { %v4135_v16 = vpop.eup %4134 }
 0x7d5   :  { %v2893_v2 = vmul.f32 %v4135_v16, %v4133_v51 }
 0x7d7   :  { %v2894_v57 = vpack.c.bf16 %v2893_v2, %v2893_v2 }
 0x7d9   :  { %2895 = vst.msk [vmem:[#allocation3 + $0x18] sm:$0xf] %vm1019_vm0, %v2894_v57  ;;  %v2897_v53 = vrot.slane %v2894_v57, 4  ;;  %3129 = vmatmul.mubr.bf16.vlgmr.msra.gmra.mrb[40].mxu0 %v2894_v57  ;;  %3170 = vmatmul.mubr.bf16.vlgmr.msra.gmra.mrb[48].mxu1 %v2894_v57 }
 0x7da   :  { %3753 = vmatpush3.bf16.msra.mxu0 %v4016_v62 }
 0x7db   :  { %2899 = vst.msk [vmem:[#allocation3] sm:$0xf0] %vm1024_vm1, %v2897_v53  ;;  %3754 = vmatprep.subr.bf16.mxu0 %v4017_v0 }
 0x7de   :  { %3755 = vmatpush3.bf16.msra.mxu0 %v4017_v0 }
 0x7df   :  { %3756 = vmatprep.subr.bf16.mxu0 %v4018_v26 }
 0x7e2   :  { %3757 = vmatpush3.bf16.msra.mxu0 %v4018_v26 }
 0x7e3   :  { %3758 = vmatprep.subr.bf16.mxu0 %v4019_v4 }
 0x7e6   :  { %3759 = vmatpush3.bf16.msra.mxu0 %v4019_v4 }
 0x7e7   :  { %3760 = vmatprep.subr.bf16.mxu0 %v4020_v7 }
 0x7ea   :  { %3761 = vmatpush3.bf16.msra.mxu0 %v4020_v7 }
 0x7eb   :  { %3762 = vmatprep.subr.bf16.mxu0 %v4021_v8 }
 0x7ee   :  { %3763 = vmatpush3.bf16.msra.mxu0 %v4021_v8 }
 0x7ef   :  { %3764 = vmatprep.subr.bf16.mxu0 %v4022_v13 }
 0x7f2   :  { %3765 = vmatpush3.bf16.msra.mxu0 %v4022_v13 }
 0x7f3   :  { %3766 = vmatprep.subr.bf16.mxu0 %v4023_v15 }
 0x7f6   :  { %3767 = vmatpush3.bf16.msra.mxu0 %v4023_v15 }
 0x8ac   :  { %v3130_v17 = vpop.f32.mrb[40].mxu0  ;;  %v3171_v11 = vpop.f32.mrb[48].mxu1 }
 0x8ad   :  { %v3178_v18 = vadd.f32 %v3130_v17, %v4594_v41  ;;  %v3180_v52 = vadd.f32 %v3171_v11, %v4980_v3  ;;  %v3132_v61 = vpop.f32.mrb[41].mxu0  ;;  %v3173_v44 = vpop.f32.mrb[49].mxu1 }
 0x8ae   :  { %v3179_v24 = vadd.f32 %v3132_v61, %v4596_v20  ;;  %v3181_v5 = vadd.f32 %v3173_v44, %v4981_v9  ;;  %v3134_v45 = vpop.f32.mrb[42].mxu0  ;;  %v3175_v43 = vpop.f32.mrb[50].mxu1 }
 0x8af   :  { %v3728_v14 = vmul.f32 -1.442695, %v3178_v18  ;;  %v3135_v46 = vpop.f32.mrb[43].mxu0  ;;  %v3176_v48 = vpop.f32.mrb[51].mxu1 }
 0x8b0   :  { %v3729_v49 = vmul.f32 -1.442695, %v3179_v24  ;;  %v3730_v63 = vmul.f32 -1.442695, %v3181_v5 }
 0x8b1   :  { %4136 = vpow2.f32 %v3728_v14 }
 0x8b2   :  { %4138 = vpow2.f32 %v3729_v49 }
 0x8b3   :  { %4140 = vpow2.f32 %v3730_v63 }
 0x8b4   :  { %4142 = vtanh.f32 %v3180_v52 }
 0x8bb   :  { %v4137_v42 = vpop.eup %4136 }
 0x8bc   :  { %v4139_v60 = vpop.eup %4138  ;;  %v3185_v41 = vadd.f32 1.0, %v4137_v42 }
 0x8bd   :  { %v3191_v50 = vadd.f32 1.0, %v4139_v60  ;;  %v4141_v20 = vpop.eup %4140 }
 0x8be   :  { %4144 = vrcp.f32 %v3185_v41  ;;  %v4143_v55 = vpop.eup %4142  ;;  %v3198_v21 = vadd.f32 1.0, %v4141_v20 }
 0x8bf   :  { %4146 = vrcp.f32 %v3191_v50 }
 0x8c0   :  { %4148 = vrcp.f32 %v3198_v21 }
 0x8c8   :  { %v4145_v56 = vpop.eup %4144 }
 0x8c9   :  { %v4147_v58 = vpop.eup %4146  ;;  %v3202_v19 = vmul.f32 %v4145_v56, %v4143_v55 }
 0x8ca   :  { %v3201_v22 = vmul.f32 %v4147_v58, %v4912_v6  ;;  %v4149_v59 = vpop.eup %4148 }
 0x8cc   :  { %v3203_v23 = vadd.f32 %v3202_v19, %v3201_v22 }
 0x8ce   :  { %4150 = vtanh.f32 %v3203_v23 }
 0x8d8   :  { %v4151_v25 = vpop.eup %4150 }
 0x8d9   :  { %v3205_v27 = vmul.f32 %v4151_v25, %v4149_v59 }
 0x8db   :  { %v3206_v28 = vpack.c.bf16 %v3205_v27, %v3205_v27 }
 0x8dd   :  { %v3208_v29 = vrot.slane %v3206_v28, 4  ;;  %3211 = vst.msk [vmem:[#allocation3] sm:$0xf] %vm1338_vm2, %v3206_v28 }
 0x8df   :  { %3210 = vst.msk [vmem:[#allocation3 + $0x18] sm:$0xf0] %vm1336_vm3, %v3208_v29 }
 0x8e4   :  { %v3212_v30 = vld [vmem:[#allocation3] sm:$0xff] }
 0x8e5   :  { %3768 = vmatprep.mubr.bf16.mxu0 %v3212_v30 }
 0x8e6   :  { %3769 = vmatmul.mubr.bf16.vlgmr.msra.gmra.mrb[44].mxu0 %v3213_v31  ;;  %v3215_v33 = vld [vmem:[#allocation3 + $0x18] sm:$0xff] }
 0x8e7   :  { %3772 = vmatprep.mubr.bf16.mxu0 %v3214_v32 }
 0x8ee   :  { %3773 = vmatmul.mubr.bf16.gmra.mrb[48].mxu0 %v3215_v33 }
 0x9b9   :  { %v3770_v35 = vpop.f32.mrb[44].mxu0 }
 0x9ba   :  { %v3330_v36 = vadd.f32 %v3770_v35, %v3731_v34  ;;  %v3321_v54 = vpop.f32.mrb[45].mxu0 }
 0x9bb   :  { %v3322_v37 = vadd.f32 %v3731_v34, %v3321_v54  ;;  %v3771_v1 = vpop.f32.mrb[46].mxu0 }
 0x9bc   :  { %3354 = vst [vmem:[#allocation12 + $0x10] sm:$0xff] %v3330_v36  ;;  %v3333_v38 = vadd.f32 %v3771_v1, %v3731_v34  ;;  %v3324_v39 = vpop.f32.mrb[47].mxu0 }
 0x9bd   :  { %3352 = vst [vmem:[#allocation12] sm:$0xff] %v3322_v37  ;;  %v3325_v40 = vadd.f32 %v3731_v34, %v3324_v39 }
 0x9be   :  { %3355 = vst [vmem:[#allocation12 + $0x18] sm:$0xff] %v3333_v38 }
 0x9bf   :  { %3353 = vst [vmem:[#allocation12 + $0x8] sm:$0xff] %v3325_v40 }
 0x9c1   :  { %v3774_v47 = vpop.f32.mrb[48].mxu0 }
 0x9c2   :  { %v3346_v12 = vadd.f32 %v3774_v47, %v3731_v34  ;;  %v3337_v10 = vpop.f32.mrb[49].mxu0 }
 0x9c3   :  { %v3338_v6 = vadd.f32 %v3731_v34, %v3337_v10  ;;  %v3775_v51 = vpop.f32.mrb[50].mxu0 }
 0x9c4   :  { %3358 = vst [vmem:[#allocation12 + $0x30] sm:$0xff] %v3346_v12  ;;  %v3349_v16 = vadd.f32 %v3775_v51, %v3731_v34  ;;  %v3340_v2 = vpop.f32.mrb[51].mxu0 }
 0x9c5   :  { %3356 = vst [vmem:[#allocation12 + $0x20] sm:$0xff] %v3338_v6  ;;  %v3341_v57 = vadd.f32 %v3731_v34, %v3340_v2 }
 0x9c6   :  { %3359 = vst [vmem:[#allocation12 + $0x38] sm:$0xff] %v3349_v16 }
 0x9c7   :  { %3357 = vst [vmem:[#allocation12 + $0x28] sm:$0xff] %v3341_v57 }
 0x9c8   :  { %4251 = shalt.err (!%p4248_p8)
}
 0x9c9   :  { %s4252_s9 = scalar_lea.hbm %s4948_s6, 1024 }
 0x9ca   :  { %p4253_p9 = scmp.ne.s32.totalorder %s4948_s6, %s4252_s9  ;;  %p4256_p10 = scmp.lt.u32.totalorder %s4252_s9, %s4948_s6 }
 0x9cc   :  { %p4258_p11 = pnand %p4256_p10, %p4253_p9 }
 0x9ce   :  { %4261 = shalt.err (!%p4258_p11)
}
 0x9cf   :  { %3371 = dma.vmem_to_hbm [thread:$0]  %s3366_s28, 1024, %s4948_s6, [#allocation6], %s4274_s1, %s4274_s1, %s4275_s21  }
 0x9d0   :  { %4268 = dma.done.wait [#allocation6], 1024  }
 0x9d1   :  { %4269 = vsyncadd [#allocation6], 4294966272 }
 0x9d2   :  { %3375 = vsyncpa [#allocation5], 1 }
 0x9d3   :  { %3376 = vsyncpa [#allocation8], 1 }
 0x9d4   :  { %3377 = vsyncpa [#allocation11], 1 }
 0x9d5   :  { %3378 = vsyncpa [#allocation6], 1 }

</bundles_post_ra>
